<compile_context>
chip_gen: v6e
topology: v6e:2x2x1
jax: 0.10.0
libtpu: 0.0.40
codegen_flags: <defaults>
</compile_context>

<pallas_src>
import jax
import jax.numpy as jnp
from jax.experimental import pallas as pl
from jax.experimental.pallas import tpu as pltpu


def _round_up(x, m):
    return (x + m - 1) // m * m


def _make_dense_kernel(num_layers, wp, M, cins, cin_pads, c_out):
    """Fused dense block (all layers) for one batch image."""

    def kernel(*refs):
        x_ref = refs[0]                       # (1, c_in, H*wp)  f32, right-padded pitch
        w_refs = refs[1:1 + num_layers]       # layer i: (9, c_out, cin_pads[i]) bf16
        bias_ref = refs[1 + num_layers]       # (L, c_out, 1) f32
        mask_ref = refs[2 + num_layers]       # (1, M) f32: 1.0 valid col, 0.0 pad col
        o_ref = refs[3 + num_layers]          # (1, L*c_out, M) f32
        fbuf_ref = refs[4 + num_layers]       # (Cbuf, LANE) bf16 padded feature buffer

        # Zero the padded feature buffer ONCE PER IMAGE (not per layer): the
        # halo ring / padded channels must be exactly zero and the scratch
        # persists across grid steps (stale activations from the previous
        # image).  A pl.when(program_id == 0) guard would be wrong with
        # dimension_semantics=("parallel",): each core has its own scratch.
        fbuf_ref[...] = jnp.zeros_like(fbuf_ref)

        # Stage the layer-0 input in one shot: x arrives already at pitch wp
        # (right-padded), so offsetting by wp+1 drops it at interior position
        # (h+1, w+1) of the padded buffer; its pad columns land on the halo.
        c_in = cins[0]
        fbuf_ref[0:c_in, wp + 1:wp + 1 + M] = x_ref[0].astype(fbuf_ref.dtype)

        mask = mask_ref[...]                   # (1, M)

        for i in range(num_layers):
            cin_p = cin_pads[i]
            # One VMEM read of this layer's padded input window (bf16).
            win = fbuf_ref[0:cin_p, :]         # (cin_p, LANE)

            # 3x3 conv: 9 MXU matmuls; the (ky, kx) tap shift is folded into
            # the flat-spatial lane offset; accumulation stays in f32 vregs.
            acc = None
            for ky in range(3):
                for kx in range(3):
                    t = 3 * ky + kx
                    off = ky * wp + kx
                    part = win[:, off:off + M]             # (cin_p, M) bf16
                    y = jnp.dot(w_refs[i][t], part,
                                preferred_element_type=jnp.float32)  # (c_out, M)
                    acc = y if acc is None else acc + y

            # Epilogue: BN scale already folded into the weights; bias + ReLU.
            act = jnp.maximum(acc + bias_ref[i], 0.0)       # (c_out, M) f32

            # Lane-dense, sublane-aligned write of this layer's channel slice.
            c0 = i * c_out
            o_ref[0, c0:c0 + c_out, :] = act.astype(o_ref.dtype)

            # Dense connectivity: append the activation once into the padded
            # feature buffer (pad columns masked to zero so the written halo
            # positions stay exactly zero).  The last layer is never re-read.
            if i < num_layers - 1:
                act_m = (act * mask).astype(fbuf_ref.dtype)
                fbuf_ref[c0:c0 + c_out, wp + 1:wp + 1 + M] = act_m

    return kernel


@jax.jit
def dense_forward(x_nchw, params):
    """Pallas forward matching dense.forward (eval-mode BatchNorm folded)."""
    N, c_in, H, W = x_nchw.shape
    L = len(params)
    c_out = params[0][0].shape[-1]
    cins = tuple(c_in if i == 0 else c_out * i for i in range(L))
    for i, (w, _, _) in enumerate(params):
        assert w.shape == (3, 3, cins[i], c_out), (i, w.shape)

    wp = _round_up(W + 2, 8)                   # padded row pitch (lane axis)
    assert wp >= W + 2                          # edge taps must hit zero halo cols
    M = H * wp                                  # flat output extent at pitch wp
    HP = H + 2
    LANE = _round_up(HP * wp + 2, 128)          # +2 covers the (ky=2,kx=2) window end
    assert LANE >= HP * wp + 2
    cin_pads = tuple(_round_up(c, 8) for c in cins)
    c_buf = _round_up(max(cin_pads), 16)        # bf16 sublane packing
    c_tot = L * c_out

    # Per-layer weights: fold the eval-mode BN scale into the conv weights
    # (before the bf16 cast; the reference does the same), reorder to
    # (tap, c_out, cin) and zero-pad cin to a sublane multiple.
    w_list = []
    for i, (w, scale, _) in enumerate(params):
        wf = w.astype(jnp.float32) * scale.astype(jnp.float32)       # (3,3,cin,c_out)
        wt = jnp.transpose(wf.reshape(9, cins[i], c_out), (0, 2, 1))  # (9,c_out,cin)
        wt = jnp.pad(wt, ((0, 0), (0, 0), (0, cin_pads[i] - cins[i])))
        w_list.append(wt.astype(jnp.bfloat16))
    bias_all = (jnp.stack([b for (_, _, b) in params])
                .reshape(L, c_out, 1).astype(jnp.float32))

    # Input already laid out at pitch wp (one tiny pad + free reshape, no
    # transpose), so the kernel stages it with a single store.
    x_flat = jnp.pad(x_nchw, ((0, 0), (0, 0), (0, 0), (0, wp - W))
                     ).reshape(N, c_in, M)

    # Valid-column mask (1.0 where w < W), passed in so the kernel needs no
    # in-kernel iota / integer mod.
    col_mask = ((jnp.arange(M, dtype=jnp.int32) % wp) < W
                ).astype(jnp.float32).reshape(1, M)

    # VMEM budget: per-dtype padded footprint, double-buffered blocks, capped
    # against the actual generation's physical VMEM (v7x: 64 MiB per core).
    def padded_bytes(shape, dtype):
        it = jnp.dtype(dtype).itemsize
        sub = 8 * (4 // it) if it < 4 else 8     # 8 for f32, 16 for bf16
        lanes = _round_up(int(shape[-1]), 128)
        subl = _round_up(int(shape[-2]), sub)
        lead = 1
        for d in shape[:-2]:
            lead *= int(d)
        return lead * subl * lanes * it

    block_bytes = (padded_bytes((1, c_in, M), jnp.float32)
                   + sum(padded_bytes((9, c_out, cp), jnp.bfloat16) for cp in cin_pads)
                   + padded_bytes((L, c_out, 1), jnp.float32)
                   + padded_bytes((1, M), jnp.float32)
                   + padded_bytes((1, c_tot, M), jnp.float32))
    scratch_bytes = padded_bytes((c_buf, LANE), jnp.bfloat16)
    try:
        vmem_cap = int(pltpu.get_tpu_info().vmem_capacity_bytes)
    except Exception:
        vmem_cap = 64 * 1024 * 1024              # conservative: v7x per-core physical
    vmem_limit = int(min(max(2 * block_bytes + scratch_bytes + (4 << 20), 16 << 20),
                         (vmem_cap * 3) // 4))

    flops = 2 * N * H * W * 9 * c_out * sum(cins)
    bytes_accessed = (int(x_flat.size) * 4
                      + sum(int(w.size) * 2 for w in w_list)
                      + int(bias_all.size) * 4 + int(col_mask.size) * 4
                      + N * c_tot * M * 4)

    kernel = _make_dense_kernel(L, wp, M, cins, cin_pads, c_out)
    in_specs = ([pl.BlockSpec((1, c_in, M), lambda n: (n, 0, 0))]
                + [pl.BlockSpec((9, c_out, cp), lambda n: (0, 0, 0))
                   for cp in cin_pads]
                + [pl.BlockSpec((L, c_out, 1), lambda n: (0, 0, 0)),
                   pl.BlockSpec((1, M), lambda n: (0, 0))])

    out_flat = pl.pallas_call(
        kernel,
        out_shape=jax.ShapeDtypeStruct((N, c_tot, M), x_nchw.dtype),
        grid=(N,),
        in_specs=in_specs,
        out_specs=pl.BlockSpec((1, c_tot, M), lambda n: (n, 0, 0)),
        scratch_shapes=[pltpu.VMEM((c_buf, LANE), jnp.bfloat16)],
        compiler_params=pltpu.CompilerParams(
            dimension_semantics=("parallel",),   # batch across TensorCores
            vmem_limit_bytes=vmem_limit),
        cost_estimate=pl.CostEstimate(
            flops=flops, transcendentals=0, bytes_accessed=bytes_accessed),
    )(x_flat, *w_list, bias_all, col_mask)

    # (N, c_tot, H*wp) -> (N, c_tot, H, W): free reshape + one contiguous
    # slice.  No NCHW<->NHWC transpose anywhere.
    return out_flat.reshape(N, c_tot, H, wp)[:, :, :, :W]


def init_dense_params(key, in_channels, out_channels, num_layers, eps=1e-5):
    """Deterministic synthetic parameters matching the PyTorch module shapes."""
    params = []
    for i in range(num_layers):
        cin = in_channels if i == 0 else out_channels * i
        key, k1, k2, k3, k4 = jax.random.split(key, 5)
        w = 0.1 * jax.random.normal(k1, (3, 3, cin, out_channels), jnp.float32)
        conv_b = 0.1 * jax.random.normal(k2, (out_channels,), jnp.float32)
        gamma = 1.0 + 0.1 * jax.random.normal(k3, (out_channels,), jnp.float32)
        beta = 0.1 * jax.random.normal(k4, (out_channels,), jnp.float32)
        running_mean = jnp.zeros((out_channels,), jnp.float32)
        running_var = jnp.ones((out_channels,), jnp.float32)
        # Fold conv bias + eval-mode BN into (scale, bias).
        scale = gamma / jnp.sqrt(running_var + eps)
        bias = beta + (conv_b - running_mean) * scale
        params.append((w, scale, bias))
    return params


def dense_forward_ref(x_nchw, params):
    """Pure-JAX reference (lax conv, same folded-weight bf16 / f32-acc recipe)."""
    feats = []
    inp = x_nchw
    for (w, scale, bias) in params:
        wf = (w * scale).astype(jnp.bfloat16)          # same fold-before-cast as kernel
        y = jax.lax.conv_general_dilated(
            inp.astype(jnp.bfloat16), wf,
            window_strides=(1, 1), padding="SAME",
            dimension_numbers=("NCHW", "HWIO", "NCHW"),
            preferred_element_type=jnp.float32)
        y = jnp.maximum(y + bias.reshape(1, -1, 1, 1), 0.0)
        feats.append(y)
        inp = jnp.concatenate(feats, axis=1)
    return jnp.concatenate(feats, axis=1)


if __name__ == "__main__":
    in_channels, out_channels, num_layers = 4, 8, 3
    N, H, W = 2, 16, 16

    key = jax.random.PRNGKey(0)
    kx, kp = jax.random.split(key)
    x = jax.random.normal(kx, (N, in_channels, H, W), jnp.float32)
    params = init_dense_params(kp, in_channels, out_channels, num_layers)

    out = dense_forward(x, params)
    out = jax.block_until_ready(out)

    assert out.shape == (N, out_channels * num_layers, H, W), out.shape
    ref = dense_forward_ref(x, params)
    max_err = float(jnp.max(jnp.abs(out - ref)))
    assert jnp.allclose(out, ref, atol=2e-3, rtol=2e-3), max_err

    print("KERNEL_OK")
</pallas_src>

<mosaic_0001>
module attributes {stable_mosaic.version = 11 : i64} {
  func.func @kernel(%arg0: i32, %arg1: memref<1x4x384xf32, #tpu.memory_space<vmem>>, %arg2: memref<9x8x8xbf16, #tpu.memory_space<vmem>>, %arg3: memref<9x8x8xbf16, #tpu.memory_space<vmem>>, %arg4: memref<9x8x16xbf16, #tpu.memory_space<vmem>>, %arg5: memref<3x8x1xf32, #tpu.memory_space<vmem>>, %arg6: memref<1x384xf32, #tpu.memory_space<vmem>>, %arg7: memref<1x24x384xf32, #tpu.memory_space<vmem>>, %arg8: memref<16x512xbf16, #tpu.memory_space<vmem>>) attributes {dimension_semantics = [#tpu.dimension_semantics<parallel>], iteration_bounds = array<i64: 2>, scalar_prefetch = 0 : i64, scratch_operands = 1 : i64, tpu.core_type = #tpu.core_type<tc>, window_params = [{transform_indices = @transform_0, window_bounds = array<i64: 1, 4, 384>}, {pipeline_mode = #tpu.pipeline_mode<synchronous>, transform_indices = @transform_1, window_bounds = array<i64: 9, 8, 8>}, {pipeline_mode = #tpu.pipeline_mode<synchronous>, transform_indices = @transform_2, window_bounds = array<i64: 9, 8, 8>}, {pipeline_mode = #tpu.pipeline_mode<synchronous>, transform_indices = @transform_3, window_bounds = array<i64: 9, 8, 16>}, {pipeline_mode = #tpu.pipeline_mode<synchronous>, transform_indices = @transform_4, window_bounds = array<i64: 3, 8, 1>}, {pipeline_mode = #tpu.pipeline_mode<synchronous>, transform_indices = @transform_5, window_bounds = array<i64: 1, 384>}, {transform_indices = @transform_6, window_bounds = array<i64: 1, 24, 384>}]} {
    %cst = arith.constant 0.000000e+00 : bf16
    %0 = vector.broadcast %cst : bf16 to vector<16x512xbf16>
    %c0 = arith.constant 0 : index
    %c0_0 = arith.constant 0 : index
    %1 = vector.load %arg8[%c0, %c0_0] : memref<16x512xbf16, #tpu.memory_space<vmem>>, vector<16x512xbf16>
    tpu.vector_store %arg8[%c0, %c0_0], %0 {strides = array<i32>} : memref<16x512xbf16, #tpu.memory_space<vmem>>, vector<16x512xbf16>,
    %c0_1 = arith.constant 0 : index
    %c0_2 = arith.constant 0 : index
    %c0_3 = arith.constant 0 : index
    %2 = vector.load %arg1[%c0_1, %c0_2, %c0_3] : memref<1x4x384xf32, #tpu.memory_space<vmem>>, vector<1x4x384xf32>
    %3 = vector.shape_cast %2 : vector<1x4x384xf32> to vector<4x384xf32>
    %4 = arith.truncf %3 : vector<4x384xf32> to vector<4x384xbf16>
    %c0_4 = arith.constant 0 : index
    %c25 = arith.constant 25 : index
    %5 = vector.load %arg8[%c0_4, %c25] : memref<16x512xbf16, #tpu.memory_space<vmem>>, vector<4x384xbf16>
    tpu.vector_store %arg8[%c0_4, %c25], %4 {strides = array<i32>} : memref<16x512xbf16, #tpu.memory_space<vmem>>, vector<4x384xbf16>,
    %c0_5 = arith.constant 0 : index
    %c0_6 = arith.constant 0 : index
    %6 = vector.load %arg6[%c0_5, %c0_6] : memref<1x384xf32, #tpu.memory_space<vmem>>, vector<1x384xf32>
    %c0_7 = arith.constant 0 : index
    %c0_8 = arith.constant 0 : index
    %7 = vector.load %arg8[%c0_7, %c0_8] : memref<16x512xbf16, #tpu.memory_space<vmem>>, vector<8x512xbf16>
    %8 = vector.extract_strided_slice %7 {offsets = [0, 0], sizes = [8, 384], strides = [1, 1]} : vector<8x512xbf16> to vector<8x384xbf16>
    %c0_9 = arith.constant 0 : index
    %c0_10 = arith.constant 0 : index
    %c0_11 = arith.constant 0 : index
    %9 = vector.load %arg2[%c0_9, %c0_10, %c0_11] : memref<9x8x8xbf16, #tpu.memory_space<vmem>>, vector<1x8x8xbf16>
    %10 = vector.shape_cast %9 : vector<1x8x8xbf16> to vector<8x8xbf16>
    %cst_12 = arith.constant dense<0.000000e+00> : vector<8x384xf32>
    %11 = tpu.matmul %10, %8, %cst_12 {dimension_numbers = #tpu.dot_dimension_numbers<[1], [0], [0], [1], [0, 0, 1, 1], [], []>} : vector<8x8xbf16>, vector<8x384xbf16>, vector<8x384xf32> -> vector<8x384xf32>
    %12 = vector.extract_strided_slice %7 {offsets = [0, 1], sizes = [8, 384], strides = [1, 1]} : vector<8x512xbf16> to vector<8x384xbf16>
    %c1 = arith.constant 1 : index
    %c0_13 = arith.constant 0 : index
    %c0_14 = arith.constant 0 : index
    %13 = vector.load %arg2[%c1, %c0_13, %c0_14] : memref<9x8x8xbf16, #tpu.memory_space<vmem>>, vector<1x8x8xbf16>
    %14 = vector.shape_cast %13 : vector<1x8x8xbf16> to vector<8x8xbf16>
    %cst_15 = arith.constant dense<0.000000e+00> : vector<8x384xf32>
    %15 = tpu.matmul %14, %12, %cst_15 {dimension_numbers = #tpu.dot_dimension_numbers<[1], [0], [0], [1], [0, 0, 1, 1], [], []>} : vector<8x8xbf16>, vector<8x384xbf16>, vector<8x384xf32> -> vector<8x384xf32>
    %16 = arith.addf %11, %15 : vector<8x384xf32>
    %17 = vector.extract_strided_slice %7 {offsets = [0, 2], sizes = [8, 384], strides = [1, 1]} : vector<8x512xbf16> to vector<8x384xbf16>
    %c2 = arith.constant 2 : index
    %c0_16 = arith.constant 0 : index
    %c0_17 = arith.constant 0 : index
    %18 = vector.load %arg2[%c2, %c0_16, %c0_17] : memref<9x8x8xbf16, #tpu.memory_space<vmem>>, vector<1x8x8xbf16>
    %19 = vector.shape_cast %18 : vector<1x8x8xbf16> to vector<8x8xbf16>
    %cst_18 = arith.constant dense<0.000000e+00> : vector<8x384xf32>
    %20 = tpu.matmul %19, %17, %cst_18 {dimension_numbers = #tpu.dot_dimension_numbers<[1], [0], [0], [1], [0, 0, 1, 1], [], []>} : vector<8x8xbf16>, vector<8x384xbf16>, vector<8x384xf32> -> vector<8x384xf32>
    %21 = arith.addf %16, %20 : vector<8x384xf32>
    %22 = vector.extract_strided_slice %7 {offsets = [0, 24], sizes = [8, 384], strides = [1, 1]} : vector<8x512xbf16> to vector<8x384xbf16>
    %c3 = arith.constant 3 : index
    %c0_19 = arith.constant 0 : index
    %c0_20 = arith.constant 0 : index
    %23 = vector.load %arg2[%c3, %c0_19, %c0_20] : memref<9x8x8xbf16, #tpu.memory_space<vmem>>, vector<1x8x8xbf16>
    %24 = vector.shape_cast %23 : vector<1x8x8xbf16> to vector<8x8xbf16>
    %cst_21 = arith.constant dense<0.000000e+00> : vector<8x384xf32>
    %25 = tpu.matmul %24, %22, %cst_21 {dimension_numbers = #tpu.dot_dimension_numbers<[1], [0], [0], [1], [0, 0, 1, 1], [], []>} : vector<8x8xbf16>, vector<8x384xbf16>, vector<8x384xf32> -> vector<8x384xf32>
    %26 = arith.addf %21, %25 : vector<8x384xf32>
    %27 = vector.extract_strided_slice %7 {offsets = [0, 25], sizes = [8, 384], strides = [1, 1]} : vector<8x512xbf16> to vector<8x384xbf16>
    %c4 = arith.constant 4 : index
    %c0_22 = arith.constant 0 : index
    %c0_23 = arith.constant 0 : index
    %28 = vector.load %arg2[%c4, %c0_22, %c0_23] : memref<9x8x8xbf16, #tpu.memory_space<vmem>>, vector<1x8x8xbf16>
    %29 = vector.shape_cast %28 : vector<1x8x8xbf16> to vector<8x8xbf16>
    %cst_24 = arith.constant dense<0.000000e+00> : vector<8x384xf32>
    %30 = tpu.matmul %29, %27, %cst_24 {dimension_numbers = #tpu.dot_dimension_numbers<[1], [0], [0], [1], [0, 0, 1, 1], [], []>} : vector<8x8xbf16>, vector<8x384xbf16>, vector<8x384xf32> -> vector<8x384xf32>
    %31 = arith.addf %26, %30 : vector<8x384xf32>
    %32 = vector.extract_strided_slice %7 {offsets = [0, 26], sizes = [8, 384], strides = [1, 1]} : vector<8x512xbf16> to vector<8x384xbf16>
    %c5 = arith.constant 5 : index
    %c0_25 = arith.constant 0 : index
    %c0_26 = arith.constant 0 : index
    %33 = vector.load %arg2[%c5, %c0_25, %c0_26] : memref<9x8x8xbf16, #tpu.memory_space<vmem>>, vector<1x8x8xbf16>
    %34 = vector.shape_cast %33 : vector<1x8x8xbf16> to vector<8x8xbf16>
    %cst_27 = arith.constant dense<0.000000e+00> : vector<8x384xf32>
    %35 = tpu.matmul %34, %32, %cst_27 {dimension_numbers = #tpu.dot_dimension_numbers<[1], [0], [0], [1], [0, 0, 1, 1], [], []>} : vector<8x8xbf16>, vector<8x384xbf16>, vector<8x384xf32> -> vector<8x384xf32>
    %36 = arith.addf %31, %35 : vector<8x384xf32>
    %37 = vector.extract_strided_slice %7 {offsets = [0, 48], sizes = [8, 384], strides = [1, 1]} : vector<8x512xbf16> to vector<8x384xbf16>
    %c6 = arith.constant 6 : index
    %c0_28 = arith.constant 0 : index
    %c0_29 = arith.constant 0 : index
    %38 = vector.load %arg2[%c6, %c0_28, %c0_29] : memref<9x8x8xbf16, #tpu.memory_space<vmem>>, vector<1x8x8xbf16>
    %39 = vector.shape_cast %38 : vector<1x8x8xbf16> to vector<8x8xbf16>
    %cst_30 = arith.constant dense<0.000000e+00> : vector<8x384xf32>
    %40 = tpu.matmul %39, %37, %cst_30 {dimension_numbers = #tpu.dot_dimension_numbers<[1], [0], [0], [1], [0, 0, 1, 1], [], []>} : vector<8x8xbf16>, vector<8x384xbf16>, vector<8x384xf32> -> vector<8x384xf32>
    %41 = arith.addf %36, %40 : vector<8x384xf32>
    %42 = vector.extract_strided_slice %7 {offsets = [0, 49], sizes = [8, 384], strides = [1, 1]} : vector<8x512xbf16> to vector<8x384xbf16>
    %c7 = arith.constant 7 : index
    %c0_31 = arith.constant 0 : index
    %c0_32 = arith.constant 0 : index
    %43 = vector.load %arg2[%c7, %c0_31, %c0_32] : memref<9x8x8xbf16, #tpu.memory_space<vmem>>, vector<1x8x8xbf16>
    %44 = vector.shape_cast %43 : vector<1x8x8xbf16> to vector<8x8xbf16>
    %cst_33 = arith.constant dense<0.000000e+00> : vector<8x384xf32>
    %45 = tpu.matmul %44, %42, %cst_33 {dimension_numbers = #tpu.dot_dimension_numbers<[1], [0], [0], [1], [0, 0, 1, 1], [], []>} : vector<8x8xbf16>, vector<8x384xbf16>, vector<8x384xf32> -> vector<8x384xf32>
    %46 = arith.addf %41, %45 : vector<8x384xf32>
    %47 = vector.extract_strided_slice %7 {offsets = [0, 50], sizes = [8, 384], strides = [1, 1]} : vector<8x512xbf16> to vector<8x384xbf16>
    %c8 = arith.constant 8 : index
    %c0_34 = arith.constant 0 : index
    %c0_35 = arith.constant 0 : index
    %48 = vector.load %arg2[%c8, %c0_34, %c0_35] : memref<9x8x8xbf16, #tpu.memory_space<vmem>>, vector<1x8x8xbf16>
    %49 = vector.shape_cast %48 : vector<1x8x8xbf16> to vector<8x8xbf16>
    %cst_36 = arith.constant dense<0.000000e+00> : vector<8x384xf32>
    %50 = tpu.matmul %49, %47, %cst_36 {dimension_numbers = #tpu.dot_dimension_numbers<[1], [0], [0], [1], [0, 0, 1, 1], [], []>} : vector<8x8xbf16>, vector<8x384xbf16>, vector<8x384xf32> -> vector<8x384xf32>
    %51 = arith.addf %46, %50 : vector<8x384xf32>
    %c0_37 = arith.constant 0 : index
    %c0_38 = arith.constant 0 : index
    %c0_39 = arith.constant 0 : index
    %52 = vector.load %arg5[%c0_37, %c0_38, %c0_39] : memref<3x8x1xf32, #tpu.memory_space<vmem>>, vector<1x8x1xf32>
    %53 = vector.shape_cast %52 : vector<1x8x1xf32> to vector<8x1xf32>
    %54 = vector.broadcast %53 : vector<8x1xf32> to vector<8x384xf32>
    %55 = arith.addf %51, %54 : vector<8x384xf32>
    %cst_40 = arith.constant 0.000000e+00 : f32
    %56 = vector.broadcast %cst_40 : f32 to vector<8x384xf32>
    %57 = arith.maximumf %55, %56 : vector<8x384xf32>
    %c0_41 = arith.constant 0 : index
    %c0_42 = arith.constant 0 : index
    %c0_43 = arith.constant 0 : index
    %58 = vector.load %arg7[%c0_41, %c0_42, %c0_43] : memref<1x24x384xf32, #tpu.memory_space<vmem>>, vector<1x8x384xf32>
    %59 = vector.shape_cast %58 : vector<1x8x384xf32> to vector<8x384xf32>
    %60 = vector.shape_cast %57 : vector<8x384xf32> to vector<1x8x384xf32>
    tpu.vector_store %arg7[%c0_41, %c0_42, %c0_43], %60 {strides = array<i32>} : memref<1x24x384xf32, #tpu.memory_space<vmem>>, vector<1x8x384xf32>,
    %61 = vector.broadcast %6 : vector<1x384xf32> to vector<8x384xf32>
    %62 = arith.mulf %57, %61 : vector<8x384xf32>
    %63 = arith.truncf %62 : vector<8x384xf32> to vector<8x384xbf16>
    %c0_44 = arith.constant 0 : index
    %c25_45 = arith.constant 25 : index
    %64 = vector.load %arg8[%c0_44, %c25_45] : memref<16x512xbf16, #tpu.memory_space<vmem>>, vector<8x384xbf16>
    tpu.vector_store %arg8[%c0_44, %c25_45], %63 {strides = array<i32>} : memref<16x512xbf16, #tpu.memory_space<vmem>>, vector<8x384xbf16>,
    %c0_46 = arith.constant 0 : index
    %c0_47 = arith.constant 0 : index
    %65 = vector.load %arg8[%c0_46, %c0_47] : memref<16x512xbf16, #tpu.memory_space<vmem>>, vector<8x512xbf16>
    %66 = vector.extract_strided_slice %65 {offsets = [0, 0], sizes = [8, 384], strides = [1, 1]} : vector<8x512xbf16> to vector<8x384xbf16>
    %c0_48 = arith.constant 0 : index
    %c0_49 = arith.constant 0 : index
    %c0_50 = arith.constant 0 : index
    %67 = vector.load %arg3[%c0_48, %c0_49, %c0_50] : memref<9x8x8xbf16, #tpu.memory_space<vmem>>, vector<1x8x8xbf16>
    %68 = vector.shape_cast %67 : vector<1x8x8xbf16> to vector<8x8xbf16>
    %cst_51 = arith.constant dense<0.000000e+00> : vector<8x384xf32>
    %69 = tpu.matmul %68, %66, %cst_51 {dimension_numbers = #tpu.dot_dimension_numbers<[1], [0], [0], [1], [0, 0, 1, 1], [], []>} : vector<8x8xbf16>, vector<8x384xbf16>, vector<8x384xf32> -> vector<8x384xf32>
    %70 = vector.extract_strided_slice %65 {offsets = [0, 1], sizes = [8, 384], strides = [1, 1]} : vector<8x512xbf16> to vector<8x384xbf16>
    %c1_52 = arith.constant 1 : index
    %c0_53 = arith.constant 0 : index
    %c0_54 = arith.constant 0 : index
    %71 = vector.load %arg3[%c1_52, %c0_53, %c0_54] : memref<9x8x8xbf16, #tpu.memory_space<vmem>>, vector<1x8x8xbf16>
    %72 = vector.shape_cast %71 : vector<1x8x8xbf16> to vector<8x8xbf16>
    %cst_55 = arith.constant dense<0.000000e+00> : vector<8x384xf32>
    %73 = tpu.matmul %72, %70, %cst_55 {dimension_numbers = #tpu.dot_dimension_numbers<[1], [0], [0], [1], [0, 0, 1, 1], [], []>} : vector<8x8xbf16>, vector<8x384xbf16>, vector<8x384xf32> -> vector<8x384xf32>
    %74 = arith.addf %69, %73 : vector<8x384xf32>
    %75 = vector.extract_strided_slice %65 {offsets = [0, 2], sizes = [8, 384], strides = [1, 1]} : vector<8x512xbf16> to vector<8x384xbf16>
    %c2_56 = arith.constant 2 : index
    %c0_57 = arith.constant 0 : index
    %c0_58 = arith.constant 0 : index
    %76 = vector.load %arg3[%c2_56, %c0_57, %c0_58] : memref<9x8x8xbf16, #tpu.memory_space<vmem>>, vector<1x8x8xbf16>
    %77 = vector.shape_cast %76 : vector<1x8x8xbf16> to vector<8x8xbf16>
    %cst_59 = arith.constant dense<0.000000e+00> : vector<8x384xf32>
    %78 = tpu.matmul %77, %75, %cst_59 {dimension_numbers = #tpu.dot_dimension_numbers<[1], [0], [0], [1], [0, 0, 1, 1], [], []>} : vector<8x8xbf16>, vector<8x384xbf16>, vector<8x384xf32> -> vector<8x384xf32>
    %79 = arith.addf %74, %78 : vector<8x384xf32>
    %80 = vector.extract_strided_slice %65 {offsets = [0, 24], sizes = [8, 384], strides = [1, 1]} : vector<8x512xbf16> to vector<8x384xbf16>
    %c3_60 = arith.constant 3 : index
    %c0_61 = arith.constant 0 : index
    %c0_62 = arith.constant 0 : index
    %81 = vector.load %arg3[%c3_60, %c0_61, %c0_62] : memref<9x8x8xbf16, #tpu.memory_space<vmem>>, vector<1x8x8xbf16>
    %82 = vector.shape_cast %81 : vector<1x8x8xbf16> to vector<8x8xbf16>
    %cst_63 = arith.constant dense<0.000000e+00> : vector<8x384xf32>
    %83 = tpu.matmul %82, %80, %cst_63 {dimension_numbers = #tpu.dot_dimension_numbers<[1], [0], [0], [1], [0, 0, 1, 1], [], []>} : vector<8x8xbf16>, vector<8x384xbf16>, vector<8x384xf32> -> vector<8x384xf32>
    %84 = arith.addf %79, %83 : vector<8x384xf32>
    %85 = vector.extract_strided_slice %65 {offsets = [0, 25], sizes = [8, 384], strides = [1, 1]} : vector<8x512xbf16> to vector<8x384xbf16>
    %c4_64 = arith.constant 4 : index
    %c0_65 = arith.constant 0 : index
    %c0_66 = arith.constant 0 : index
    %86 = vector.load %arg3[%c4_64, %c0_65, %c0_66] : memref<9x8x8xbf16, #tpu.memory_space<vmem>>, vector<1x8x8xbf16>
    %87 = vector.shape_cast %86 : vector<1x8x8xbf16> to vector<8x8xbf16>
    %cst_67 = arith.constant dense<0.000000e+00> : vector<8x384xf32>
    %88 = tpu.matmul %87, %85, %cst_67 {dimension_numbers = #tpu.dot_dimension_numbers<[1], [0], [0], [1], [0, 0, 1, 1], [], []>} : vector<8x8xbf16>, vector<8x384xbf16>, vector<8x384xf32> -> vector<8x384xf32>
    %89 = arith.addf %84, %88 : vector<8x384xf32>
    %90 = vector.extract_strided_slice %65 {offsets = [0, 26], sizes = [8, 384], strides = [1, 1]} : vector<8x512xbf16> to vector<8x384xbf16>
    %c5_68 = arith.constant 5 : index
    %c0_69 = arith.constant 0 : index
    %c0_70 = arith.constant 0 : index
    %91 = vector.load %arg3[%c5_68, %c0_69, %c0_70] : memref<9x8x8xbf16, #tpu.memory_space<vmem>>, vector<1x8x8xbf16>
    %92 = vector.shape_cast %91 : vector<1x8x8xbf16> to vector<8x8xbf16>
    %cst_71 = arith.constant dense<0.000000e+00> : vector<8x384xf32>
    %93 = tpu.matmul %92, %90, %cst_71 {dimension_numbers = #tpu.dot_dimension_numbers<[1], [0], [0], [1], [0, 0, 1, 1], [], []>} : vector<8x8xbf16>, vector<8x384xbf16>, vector<8x384xf32> -> vector<8x384xf32>
    %94 = arith.addf %89, %93 : vector<8x384xf32>
    %95 = vector.extract_strided_slice %65 {offsets = [0, 48], sizes = [8, 384], strides = [1, 1]} : vector<8x512xbf16> to vector<8x384xbf16>
    %c6_72 = arith.constant 6 : index
    %c0_73 = arith.constant 0 : index
    %c0_74 = arith.constant 0 : index
    %96 = vector.load %arg3[%c6_72, %c0_73, %c0_74] : memref<9x8x8xbf16, #tpu.memory_space<vmem>>, vector<1x8x8xbf16>
    %97 = vector.shape_cast %96 : vector<1x8x8xbf16> to vector<8x8xbf16>
    %cst_75 = arith.constant dense<0.000000e+00> : vector<8x384xf32>
    %98 = tpu.matmul %97, %95, %cst_75 {dimension_numbers = #tpu.dot_dimension_numbers<[1], [0], [0], [1], [0, 0, 1, 1], [], []>} : vector<8x8xbf16>, vector<8x384xbf16>, vector<8x384xf32> -> vector<8x384xf32>
    %99 = arith.addf %94, %98 : vector<8x384xf32>
    %100 = vector.extract_strided_slice %65 {offsets = [0, 49], sizes = [8, 384], strides = [1, 1]} : vector<8x512xbf16> to vector<8x384xbf16>
    %c7_76 = arith.constant 7 : index
    %c0_77 = arith.constant 0 : index
    %c0_78 = arith.constant 0 : index
    %101 = vector.load %arg3[%c7_76, %c0_77, %c0_78] : memref<9x8x8xbf16, #tpu.memory_space<vmem>>, vector<1x8x8xbf16>
    %102 = vector.shape_cast %101 : vector<1x8x8xbf16> to vector<8x8xbf16>
    %cst_79 = arith.constant dense<0.000000e+00> : vector<8x384xf32>
    %103 = tpu.matmul %102, %100, %cst_79 {dimension_numbers = #tpu.dot_dimension_numbers<[1], [0], [0], [1], [0, 0, 1, 1], [], []>} : vector<8x8xbf16>, vector<8x384xbf16>, vector<8x384xf32> -> vector<8x384xf32>
    %104 = arith.addf %99, %103 : vector<8x384xf32>
    %105 = vector.extract_strided_slice %65 {offsets = [0, 50], sizes = [8, 384], strides = [1, 1]} : vector<8x512xbf16> to vector<8x384xbf16>
    %c8_80 = arith.constant 8 : index
    %c0_81 = arith.constant 0 : index
    %c0_82 = arith.constant 0 : index
    %106 = vector.load %arg3[%c8_80, %c0_81, %c0_82] : memref<9x8x8xbf16, #tpu.memory_space<vmem>>, vector<1x8x8xbf16>
    %107 = vector.shape_cast %106 : vector<1x8x8xbf16> to vector<8x8xbf16>
    %cst_83 = arith.constant dense<0.000000e+00> : vector<8x384xf32>
    %108 = tpu.matmul %107, %105, %cst_83 {dimension_numbers = #tpu.dot_dimension_numbers<[1], [0], [0], [1], [0, 0, 1, 1], [], []>} : vector<8x8xbf16>, vector<8x384xbf16>, vector<8x384xf32> -> vector<8x384xf32>
    %109 = arith.addf %104, %108 : vector<8x384xf32>
    %c1_84 = arith.constant 1 : index
    %c0_85 = arith.constant 0 : index
    %c0_86 = arith.constant 0 : index
    %110 = vector.load %arg5[%c1_84, %c0_85, %c0_86] : memref<3x8x1xf32, #tpu.memory_space<vmem>>, vector<1x8x1xf32>
    %111 = vector.shape_cast %110 : vector<1x8x1xf32> to vector<8x1xf32>
    %112 = vector.broadcast %111 : vector<8x1xf32> to vector<8x384xf32>
    %113 = arith.addf %109, %112 : vector<8x384xf32>
    %cst_87 = arith.constant 0.000000e+00 : f32
    %114 = vector.broadcast %cst_87 : f32 to vector<8x384xf32>
    %115 = arith.maximumf %113, %114 : vector<8x384xf32>
    %c0_88 = arith.constant 0 : index
    %c8_89 = arith.constant 8 : index
    %c0_90 = arith.constant 0 : index
    %116 = vector.load %arg7[%c0_88, %c8_89, %c0_90] : memref<1x24x384xf32, #tpu.memory_space<vmem>>, vector<1x8x384xf32>
    %117 = vector.shape_cast %116 : vector<1x8x384xf32> to vector<8x384xf32>
    %118 = vector.shape_cast %115 : vector<8x384xf32> to vector<1x8x384xf32>
    tpu.vector_store %arg7[%c0_88, %c8_89, %c0_90], %118 {strides = array<i32>} : memref<1x24x384xf32, #tpu.memory_space<vmem>>, vector<1x8x384xf32>,
    %119 = vector.broadcast %6 : vector<1x384xf32> to vector<8x384xf32>
    %120 = arith.mulf %115, %119 : vector<8x384xf32>
    %121 = arith.truncf %120 : vector<8x384xf32> to vector<8x384xbf16>
    %c8_91 = arith.constant 8 : index
    %c25_92 = arith.constant 25 : index
    %122 = vector.load %arg8[%c8_91, %c25_92] : memref<16x512xbf16, #tpu.memory_space<vmem>>, vector<8x384xbf16>
    tpu.vector_store %arg8[%c8_91, %c25_92], %121 {strides = array<i32>} : memref<16x512xbf16, #tpu.memory_space<vmem>>, vector<8x384xbf16>,
    %c0_93 = arith.constant 0 : index
    %c0_94 = arith.constant 0 : index
    %123 = vector.load %arg8[%c0_93, %c0_94] : memref<16x512xbf16, #tpu.memory_space<vmem>>, vector<16x512xbf16>
    %124 = vector.extract_strided_slice %123 {offsets = [0, 0], sizes = [16, 384], strides = [1, 1]} : vector<16x512xbf16> to vector<16x384xbf16>
    %c0_95 = arith.constant 0 : index
    %c0_96 = arith.constant 0 : index
    %c0_97 = arith.constant 0 : index
    %125 = vector.load %arg4[%c0_95, %c0_96, %c0_97] : memref<9x8x16xbf16, #tpu.memory_space<vmem>>, vector<1x8x16xbf16>
    %126 = vector.shape_cast %125 : vector<1x8x16xbf16> to vector<8x16xbf16>
    %cst_98 = arith.constant dense<0.000000e+00> : vector<8x384xf32>
    %127 = tpu.matmul %126, %124, %cst_98 {dimension_numbers = #tpu.dot_dimension_numbers<[1], [0], [0], [1], [0, 0, 1, 1], [], []>} : vector<8x16xbf16>, vector<16x384xbf16>, vector<8x384xf32> -> vector<8x384xf32>
    %128 = vector.extract_strided_slice %123 {offsets = [0, 1], sizes = [16, 384], strides = [1, 1]} : vector<16x512xbf16> to vector<16x384xbf16>
    %c1_99 = arith.constant 1 : index
    %c0_100 = arith.constant 0 : index
    %c0_101 = arith.constant 0 : index
    %129 = vector.load %arg4[%c1_99, %c0_100, %c0_101] : memref<9x8x16xbf16, #tpu.memory_space<vmem>>, vector<1x8x16xbf16>
    %130 = vector.shape_cast %129 : vector<1x8x16xbf16> to vector<8x16xbf16>
    %cst_102 = arith.constant dense<0.000000e+00> : vector<8x384xf32>
    %131 = tpu.matmul %130, %128, %cst_102 {dimension_numbers = #tpu.dot_dimension_numbers<[1], [0], [0], [1], [0, 0, 1, 1], [], []>} : vector<8x16xbf16>, vector<16x384xbf16>, vector<8x384xf32> -> vector<8x384xf32>
    %132 = arith.addf %127, %131 : vector<8x384xf32>
    %133 = vector.extract_strided_slice %123 {offsets = [0, 2], sizes = [16, 384], strides = [1, 1]} : vector<16x512xbf16> to vector<16x384xbf16>
    %c2_103 = arith.constant 2 : index
    %c0_104 = arith.constant 0 : index
    %c0_105 = arith.constant 0 : index
    %134 = vector.load %arg4[%c2_103, %c0_104, %c0_105] : memref<9x8x16xbf16, #tpu.memory_space<vmem>>, vector<1x8x16xbf16>
    %135 = vector.shape_cast %134 : vector<1x8x16xbf16> to vector<8x16xbf16>
    %cst_106 = arith.constant dense<0.000000e+00> : vector<8x384xf32>
    %136 = tpu.matmul %135, %133, %cst_106 {dimension_numbers = #tpu.dot_dimension_numbers<[1], [0], [0], [1], [0, 0, 1, 1], [], []>} : vector<8x16xbf16>, vector<16x384xbf16>, vector<8x384xf32> -> vector<8x384xf32>
    %137 = arith.addf %132, %136 : vector<8x384xf32>
    %138 = vector.extract_strided_slice %123 {offsets = [0, 24], sizes = [16, 384], strides = [1, 1]} : vector<16x512xbf16> to vector<16x384xbf16>
    %c3_107 = arith.constant 3 : index
    %c0_108 = arith.constant 0 : index
    %c0_109 = arith.constant 0 : index
    %139 = vector.load %arg4[%c3_107, %c0_108, %c0_109] : memref<9x8x16xbf16, #tpu.memory_space<vmem>>, vector<1x8x16xbf16>
    %140 = vector.shape_cast %139 : vector<1x8x16xbf16> to vector<8x16xbf16>
    %cst_110 = arith.constant dense<0.000000e+00> : vector<8x384xf32>
    %141 = tpu.matmul %140, %138, %cst_110 {dimension_numbers = #tpu.dot_dimension_numbers<[1], [0], [0], [1], [0, 0, 1, 1], [], []>} : vector<8x16xbf16>, vector<16x384xbf16>, vector<8x384xf32> -> vector<8x384xf32>
    %142 = arith.addf %137, %141 : vector<8x384xf32>
    %143 = vector.extract_strided_slice %123 {offsets = [0, 25], sizes = [16, 384], strides = [1, 1]} : vector<16x512xbf16> to vector<16x384xbf16>
    %c4_111 = arith.constant 4 : index
    %c0_112 = arith.constant 0 : index
    %c0_113 = arith.constant 0 : index
    %144 = vector.load %arg4[%c4_111, %c0_112, %c0_113] : memref<9x8x16xbf16, #tpu.memory_space<vmem>>, vector<1x8x16xbf16>
    %145 = vector.shape_cast %144 : vector<1x8x16xbf16> to vector<8x16xbf16>
    %cst_114 = arith.constant dense<0.000000e+00> : vector<8x384xf32>
    %146 = tpu.matmul %145, %143, %cst_114 {dimension_numbers = #tpu.dot_dimension_numbers<[1], [0], [0], [1], [0, 0, 1, 1], [], []>} : vector<8x16xbf16>, vector<16x384xbf16>, vector<8x384xf32> -> vector<8x384xf32>
    %147 = arith.addf %142, %146 : vector<8x384xf32>
    %148 = vector.extract_strided_slice %123 {offsets = [0, 26], sizes = [16, 384], strides = [1, 1]} : vector<16x512xbf16> to vector<16x384xbf16>
    %c5_115 = arith.constant 5 : index
    %c0_116 = arith.constant 0 : index
    %c0_117 = arith.constant 0 : index
    %149 = vector.load %arg4[%c5_115, %c0_116, %c0_117] : memref<9x8x16xbf16, #tpu.memory_space<vmem>>, vector<1x8x16xbf16>
    %150 = vector.shape_cast %149 : vector<1x8x16xbf16> to vector<8x16xbf16>
    %cst_118 = arith.constant dense<0.000000e+00> : vector<8x384xf32>
    %151 = tpu.matmul %150, %148, %cst_118 {dimension_numbers = #tpu.dot_dimension_numbers<[1], [0], [0], [1], [0, 0, 1, 1], [], []>} : vector<8x16xbf16>, vector<16x384xbf16>, vector<8x384xf32> -> vector<8x384xf32>
    %152 = arith.addf %147, %151 : vector<8x384xf32>
    %153 = vector.extract_strided_slice %123 {offsets = [0, 48], sizes = [16, 384], strides = [1, 1]} : vector<16x512xbf16> to vector<16x384xbf16>
    %c6_119 = arith.constant 6 : index
    %c0_120 = arith.constant 0 : index
    %c0_121 = arith.constant 0 : index
    %154 = vector.load %arg4[%c6_119, %c0_120, %c0_121] : memref<9x8x16xbf16, #tpu.memory_space<vmem>>, vector<1x8x16xbf16>
    %155 = vector.shape_cast %154 : vector<1x8x16xbf16> to vector<8x16xbf16>
    %cst_122 = arith.constant dense<0.000000e+00> : vector<8x384xf32>
    %156 = tpu.matmul %155, %153, %cst_122 {dimension_numbers = #tpu.dot_dimension_numbers<[1], [0], [0], [1], [0, 0, 1, 1], [], []>} : vector<8x16xbf16>, vector<16x384xbf16>, vector<8x384xf32> -> vector<8x384xf32>
    %157 = arith.addf %152, %156 : vector<8x384xf32>
    %158 = vector.extract_strided_slice %123 {offsets = [0, 49], sizes = [16, 384], strides = [1, 1]} : vector<16x512xbf16> to vector<16x384xbf16>
    %c7_123 = arith.constant 7 : index
    %c0_124 = arith.constant 0 : index
    %c0_125 = arith.constant 0 : index
    %159 = vector.load %arg4[%c7_123, %c0_124, %c0_125] : memref<9x8x16xbf16, #tpu.memory_space<vmem>>, vector<1x8x16xbf16>
    %160 = vector.shape_cast %159 : vector<1x8x16xbf16> to vector<8x16xbf16>
    %cst_126 = arith.constant dense<0.000000e+00> : vector<8x384xf32>
    %161 = tpu.matmul %160, %158, %cst_126 {dimension_numbers = #tpu.dot_dimension_numbers<[1], [0], [0], [1], [0, 0, 1, 1], [], []>} : vector<8x16xbf16>, vector<16x384xbf16>, vector<8x384xf32> -> vector<8x384xf32>
    %162 = arith.addf %157, %161 : vector<8x384xf32>
    %163 = vector.extract_strided_slice %123 {offsets = [0, 50], sizes = [16, 384], strides = [1, 1]} : vector<16x512xbf16> to vector<16x384xbf16>
    %c8_127 = arith.constant 8 : index
    %c0_128 = arith.constant 0 : index
    %c0_129 = arith.constant 0 : index
    %164 = vector.load %arg4[%c8_127, %c0_128, %c0_129] : memref<9x8x16xbf16, #tpu.memory_space<vmem>>, vector<1x8x16xbf16>
    %165 = vector.shape_cast %164 : vector<1x8x16xbf16> to vector<8x16xbf16>
    %cst_130 = arith.constant dense<0.000000e+00> : vector<8x384xf32>
    %166 = tpu.matmul %165, %163, %cst_130 {dimension_numbers = #tpu.dot_dimension_numbers<[1], [0], [0], [1], [0, 0, 1, 1], [], []>} : vector<8x16xbf16>, vector<16x384xbf16>, vector<8x384xf32> -> vector<8x384xf32>
    %167 = arith.addf %162, %166 : vector<8x384xf32>
    %c2_131 = arith.constant 2 : index
    %c0_132 = arith.constant 0 : index
    %c0_133 = arith.constant 0 : index
    %168 = vector.load %arg5[%c2_131, %c0_132, %c0_133] : memref<3x8x1xf32, #tpu.memory_space<vmem>>, vector<1x8x1xf32>
    %169 = vector.shape_cast %168 : vector<1x8x1xf32> to vector<8x1xf32>
    %170 = vector.broadcast %169 : vector<8x1xf32> to vector<8x384xf32>
    %171 = arith.addf %167, %170 : vector<8x384xf32>
    %cst_134 = arith.constant 0.000000e+00 : f32
    %172 = vector.broadcast %cst_134 : f32 to vector<8x384xf32>
    %173 = arith.maximumf %171, %172 : vector<8x384xf32>
    %c0_135 = arith.constant 0 : index
    %c16 = arith.constant 16 : index
    %c0_136 = arith.constant 0 : index
    %174 = vector.load %arg7[%c0_135, %c16, %c0_136] : memref<1x24x384xf32, #tpu.memory_space<vmem>>, vector<1x8x384xf32>
    %175 = vector.shape_cast %174 : vector<1x8x384xf32> to vector<8x384xf32>
    %176 = vector.shape_cast %173 : vector<8x384xf32> to vector<1x8x384xf32>
    tpu.vector_store %arg7[%c0_135, %c16, %c0_136], %176 {strides = array<i32>} : memref<1x24x384xf32, #tpu.memory_space<vmem>>, vector<1x8x384xf32>,
    return
  }
  func.func @transform_0(%arg0: i32) -> (i32, i32, i32) {
    %c0_i32 = arith.constant 0 : i32
    %c0_i32_0 = arith.constant 0 : i32
    %c0_i32_1 = arith.constant 0 : i32
    return %arg0, %c0_i32, %c0_i32_0 : i32, i32, i32
  }
  func.func @transform_1(%arg0: i32) -> (i32, i32, i32) {
    %c0_i32 = arith.constant 0 : i32
    %c0_i32_0 = arith.constant 0 : i32
    %c0_i32_1 = arith.constant 0 : i32
    %c0_i32_2 = arith.constant 0 : i32
    return %c0_i32, %c0_i32_0, %c0_i32_1 : i32, i32, i32
  }
  func.func @transform_2(%arg0: i32) -> (i32, i32, i32) {
    %c0_i32 = arith.constant 0 : i32
    %c0_i32_0 = arith.constant 0 : i32
    %c0_i32_1 = arith.constant 0 : i32
    %c0_i32_2 = arith.constant 0 : i32
    return %c0_i32, %c0_i32_0, %c0_i32_1 : i32, i32, i32
  }
  func.func @transform_3(%arg0: i32) -> (i32, i32, i32) {
    %c0_i32 = arith.constant 0 : i32
    %c0_i32_0 = arith.constant 0 : i32
    %c0_i32_1 = arith.constant 0 : i32
    %c0_i32_2 = arith.constant 0 : i32
    return %c0_i32, %c0_i32_0, %c0_i32_1 : i32, i32, i32
  }
  func.func @transform_4(%arg0: i32) -> (i32, i32, i32) {
    %c0_i32 = arith.constant 0 : i32
    %c0_i32_0 = arith.constant 0 : i32
    %c0_i32_1 = arith.constant 0 : i32
    %c0_i32_2 = arith.constant 0 : i32
    return %c0_i32, %c0_i32_0, %c0_i32_1 : i32, i32, i32
  }
  func.func @transform_5(%arg0: i32) -> (i32, i32) {
    %c0_i32 = arith.constant 0 : i32
    %c0_i32_0 = arith.constant 0 : i32
    %c0_i32_1 = arith.constant 0 : i32
    return %c0_i32, %c0_i32_0 : i32, i32
  }
  func.func @transform_6(%arg0: i32) -> (i32, i32, i32) {
    %c0_i32 = arith.constant 0 : i32
    %c0_i32_0 = arith.constant 0 : i32
    %c0_i32_1 = arith.constant 0 : i32
    return %arg0, %c0_i32, %c0_i32_0 : i32, i32, i32
  }
}

</mosaic_0001>

<bundles_post_ra>
// kernel: dense_forward.1
= control target key start
LH: loop header
LB: loop body
LE: loop exit
PB: predicated region body
PF: predicated region fallthrough
CT: control target
= control target key end

     0   :  { %s3794_s21 = smov 0   ;;  %s4393_s0 = inlined_call_operand.vmem [shape: f32[2,4,384], index: 0, kind: input, shape index: {}]   ;;  %s4394_s1 = inlined_call_operand.vmem [shape: bf16[9,8,8], index: 1, kind: input, shape index: {}]   ;;  %s4395_s2 = inlined_call_operand.vmem [shape: bf16[9,8,8], index: 2, kind: input, shape index: {}]   ;;  %s4396_s3 = inlined_call_operand.vmem [shape: bf16[9,8,16], index: 3, kind: input, shape index: {}]   ;;  %s4397_s4 = inlined_call_operand.vmem [shape: f32[3,8,1], index: 4, kind: input, shape index: {}]   ;;  %s4398_s5 = inlined_call_operand.vmem [shape: f32[1,384], index: 5, kind: input, shape index: {}]   ;;  %s4399_s6 = inlined_call_operand.vmem [shape: f32[2,24,384], index: 6, kind: output, shape index: {}]  }
   0x1 LB: > { %s3362_s22 = sadd.s32 4294967295, %s3745_s21   ;;  %p3366_p0 = scmp.ge.s32.totalorder %s3745_s21, 1  ;;  %s3745_s21 = sphi %s3794_s21, %s16_s21  }
   0x2   : > { %p212_p1 = scmp.lt.s32.totalorder %s3745_s21, 3 }
   0x4   : > { %p213_p2 = pnand %p3366_p0, %p212_p1 }
   0x5   : > { %p242_p3 = scmp.lt.s32.totalorder (!%p213_p2), %s3362_s22, 1  ;;  %s3748_s27 = smov (!%p213_p2), 25  }
   0x6   : > { %216 = sbr.rel (%p213_p2) target bundleno = 1581 (0x62d), region = 44  ;;  %s3751_s28 = smov (!%p213_p2), 127  }
   0x7   : > { %s3752_s29 = smov (!%p213_p2), 126   ;;  %s3753_s30 = smov (!%p213_p2), 104  }
   0x8   : > { %s3754_s7 = smov (!%p213_p2), 103   ;;  %s3755_s8 = smov (!%p213_p2), 102  }
   0x9   : > { %s3756_s9 = smov (!%p213_p2), 80   ;;  %s3757_s10 = smov (!%p213_p2), 79  }
   0xa   : > { %s3758_s11 = smov (!%p213_p2), 78  }
   0xb   : > { %v3747_v0 = vmov 0   ;;  %s4412_s22 = smov (!%p242_p3, %s3362_s22), 1  ;;  %vm286_vm0 = vcmask 1041608   ;;  %vm287_vm1 = vcmask 1045508   ;;  %vm279_vm2 = vcmask 203776   ;;  %v1280_v20 = vld [vmem:[%s4397_s4] sm:$0xff] }
   0xc   : > { %253 = vst [vmem:[#allocation2] sm:$0xff] %v3747_v0  ;;  %254 = vst [vmem:[#allocation2 + $0x8] sm:$0xff] %v3747_v0  ;;  %368 = vmatprep.mubr.bf16.mxu0 %v3747_v0  ;;  %3731 = vset.pattern.permute.xlu0 %v3747_v0  ;;  %s3709_s23 = smul.u32 12, %s4412_s22  ;;  %vm290_vm4 = vcmask 1041408   ;;  %vm291_vm5 = vcmask 201732   ;;  %vm281_vm6 = vcmask 1043456  }
   0xd   : > { %255 = vst [vmem:[#allocation2 + $0x10] sm:$0xff] %v3747_v0  ;;  %256 = vst [vmem:[#allocation2 + $0x18] sm:$0xff] %v3747_v0  ;;  %3732 = vset.pattern.permute.xlu1 %v3747_v0  ;;  %v3749_v13 = vmov 0.0   ;;  %vm3750_vm8 = vmmov 0   ;;  %vm318_vm9 = vcmask 1039360   ;;  %vm322_vm10 = vcmask 64512  }
   0xe   : > { %s246_s26 = scalar_lea.vmem %s4393_s0, %s3709_s23  ;;  %vm288_vm3 = vmor %vm287_vm1, %vm286_vm0  ;;  %3547 = vmatprep.subr.bf16.mxu1 %v3749_v13  ;;  %3549 = vmatprep.mubr.msk.bf16.mxu1 %vm3750_vm8, %v3749_v13  ;;  %v3371_v28 = vld [vmem:[%s4394_s1 + $0x4] sm:$0xf]  ;;  %vm520_vm11 = vcmask 1031168   ;;  %v297_v39 = vld [vmem:[%s4394_s1] sm:$0xf]  ;;  %vm630_vm12 = vcmask 850944  }
   0xf   : > { %v257_v1 = vld [vmem:[%s246_s26] sm:$0xff]  ;;  %v258_v3 = vld [vmem:[%s246_s26 + $0x8] sm:$0xf]  ;;  %vm292_vm7 = vmor %vm291_vm5, %vm290_vm4  ;;  %vm740_vm13 = vcmask 842752   ;;  %vm850_vm14 = vcmask 834560   ;;  %vm960_vm15 = vcmask 654336  }
  0x10   : > { %v260_v2 = vcombine.high %v257_v1, %v257_v1  ;;  %v3488_v5 = vpack.c.bf16 %v258_v3, %v258_v3  ;;  %v3382_v49 = vld [vmem:[%s4394_s1 + $0x8] sm:$0xf]  ;;  %v3386_v59 = vld [vmem:[%s4394_s1 + $0xc] sm:$0xf]  ;;  %vm1070_vm0 = vcmask 646144   ;;  %vm4400_vm1 = vcmask 637952  }
  0x11   : > { %s3710_s19 = smul.u32 72, %s4412_s22  ;;  %vm1337_vm4 = vcmask 1047556  }
  0x12   : > { %v3487_v4 = vpack.c.bf16 %v260_v2, %v257_v1 }
  0x13   : > { %s4019_s25 = scalar_lea.vmem %s4399_s6, %s3710_s19 }
  0x14   : > { %273 = vrot.lane.b32.xlu0 %v3487_v4, %s3748_s27 }
  0x18   : > { %275 = vrot.lane.b32.xlu0 %v3488_v5, %s3748_s27 }
  0x86   : > { %v274_v6 = vpop.permute.xlu0 %273 }
  0x87   : > { %v277_v7 = vrot.slane %v274_v6, 4 }
  0x89   : > { %v280_v8 = vsel %vm279_vm2, %v277_v7, %v274_v6  ;;  %v3390_v6 = vld [vmem:[%s4394_s1 + $0x10] sm:$0xf] }
  0x8a   : > { %289 = vst.msk [vmem:[#allocation2] sm:$0x33] %vm288_vm3, %v280_v8  ;;  %v276_v9 = vpop.permute.xlu0 %275  ;;  %vm1336_vm3 = vcmask 1043656  }
  0x8b   : > { %v278_v10 = vrot.slane %v276_v9, 4  ;;  %vm4035_vm5 = vmor %vm1337_vm4, %vm1336_vm3  ;;  %vm4405_vm3 = vcmask 637952  }
  0x8c   : > { %vm4406_vm4 = vmmov %vm4405_vm3 }
  0x8d   : > { %v282_v11 = vsel %vm281_vm6, %v277_v7, %v278_v10 }
  0x8e   : > { %v283_v12 = vsel %vm279_vm2, %v282_v11, %v276_v9 }
  0x8f   : > { %293 = vst.msk [vmem:[#allocation2 + $0x8] sm:$0x33] %vm292_vm7, %v283_v12  ;;  %vm1340_vm7 = vcmask 203780  }
  0x91   : > { %v295_v14 = vld [vmem:[#allocation2] sm:$0xff] }
  0x92   : > { %v3821_v15 = vcombine.low %v295_v14, %v295_v14  ;;  %v3373_v17 = vcombine.high %v295_v14, %v295_v14 }
  0x94   : > { %310 = vrot.lane.b32.xlu1 %v3821_v15, %s3751_s28  ;;  %v421_v32 = vsel %vm281_vm6, %v3821_v15, 0 }
  0x96   : > { %v296_v16 = vld [vmem:[#allocation2 + $0x8] sm:$0xff] }
  0x97   : > { %v3827_v18 = vcombine.low %v296_v16, %v296_v16  ;;  %v3375_v19 = vcombine.high %v296_v16, %v296_v16 }
  0x98   : > { %312 = vrot.lane.b32.xlu1 %v3373_v17, %s3751_s28 }
  0x99   : > { %314 = vrot.lane.b32.xlu0 %v3827_v18, %s3751_s28  ;;  %v427_v36 = vsel %vm281_vm6, %v3827_v18, 0 }
  0x9c   : > { %316 = vrot.lane.b32.xlu1 %v3375_v19, %s3751_s28 }
  0x9d   : > { %512 = vrot.lane.b32.xlu0 %v3821_v15, %s3752_s29 }
  0xa0   : > { %514 = vrot.lane.b32.xlu1 %v3373_v17, %s3752_s29 }
  0xa1   : > { %516 = vrot.lane.b32.xlu0 %v3827_v18, %s3752_s29 }
  0xa4   : > { %518 = vrot.lane.b32.xlu1 %v3375_v19, %s3752_s29 }
  0xa5   : > { %622 = vrot.lane.b32.xlu0 %v3821_v15, %s3753_s30 }
  0xa8   : > { %624 = vrot.lane.b32.xlu1 %v3373_v17, %s3753_s30 }
  0xa9   : > { %626 = vrot.lane.b32.xlu0 %v3827_v18, %s3753_s30 }
  0xac   : > { %628 = vrot.lane.b32.xlu1 %v3375_v19, %s3753_s30 }
  0xad   : > { %732 = vrot.lane.b32.xlu0 %v3821_v15, %s3754_s7 }
  0xb0   : > { %734 = vrot.lane.b32.xlu1 %v3373_v17, %s3754_s7 }
  0xb1   : > { %736 = vrot.lane.b32.xlu0 %v3827_v18, %s3754_s7 }
  0xb4   : > { %738 = vrot.lane.b32.xlu1 %v3375_v19, %s3754_s7 }
  0xb5   : > { %842 = vrot.lane.b32.xlu0 %v3821_v15, %s3755_s8 }
  0xb8   : > { %844 = vrot.lane.b32.xlu1 %v3373_v17, %s3755_s8 }
  0xb9   : > { %846 = vrot.lane.b32.xlu0 %v3827_v18, %s3755_s8 }
  0xbc   : > { %848 = vrot.lane.b32.xlu1 %v3375_v19, %s3755_s8 }
  0xbd   : > { %952 = vrot.lane.b32.xlu0 %v3821_v15, %s3756_s9 }
  0xc0   : > { %954 = vrot.lane.b32.xlu1 %v3373_v17, %s3756_s9 }
  0xc1   : > { %956 = vrot.lane.b32.xlu0 %v3827_v18, %s3756_s9 }
  0xc4   : > { %958 = vrot.lane.b32.xlu1 %v3375_v19, %s3756_s9 }
  0xc5   : > { %1062 = vrot.lane.b32.xlu0 %v3821_v15, %s3757_s10 }
  0xc8   : > { %1064 = vrot.lane.b32.xlu1 %v3373_v17, %s3757_s10 }
  0xc9   : > { %1066 = vrot.lane.b32.xlu0 %v3827_v18, %s3757_s10 }
  0xcc   : > { %1068 = vrot.lane.b32.xlu1 %v3375_v19, %s3757_s10 }
  0xcd   : > { %1172 = vrot.lane.b32.xlu0 %v3821_v15, %s3758_s11 }
  0xd0   : > { %1174 = vrot.lane.b32.xlu1 %v3373_v17, %s3758_s11 }
  0xd1   : > { %1176 = vrot.lane.b32.xlu0 %v3827_v18, %s3758_s11 }
  0xd4   : > { %1178 = vrot.lane.b32.xlu1 %v3375_v19, %s3758_s11 }
  0xd5   : > { %1283 = vperm.xlu0 %3731, %v1280_v20  }
 0x106   : > { %v311_v21 = vpop.permute.xlu1 %310 }
 0x10a   : > { %v313_v22 = vpop.permute.xlu1 %312 }
 0x10b   : > { %v315_v23 = vpop.permute.xlu0 %314  ;;  %v319_v24 = vsel %vm318_vm9, %v311_v21, %v313_v22 }
 0x10c   : > { %v320_v25 = vsel %vm318_vm9, %v313_v22, %v315_v23  ;;  %v328_v26 = vsel %vm281_vm6, %v319_v24, 0 }
 0x10d   : > { %3376 = vmatprep.subr.msk.bf16.mxu0 %vm281_vm6, %v320_v25 }
 0x10e   : > { %v317_v27 = vpop.permute.xlu1 %316  ;;  %351 = vmatpush1.bf16.msra.mxu0 %v328_v26 }
 0x10f   : > { %3379 = vmatprep.subr.msk.bf16.mxu0 %vm281_vm6, %v3373_v17  ;;  %v513_v29 = vpop.permute.xlu0 %512  ;;  %v321_v30 = vsel %vm318_vm9, %v315_v23, %v317_v27  ;;  %v3394_v17 = vld [vmem:[%s4394_s1 + $0x14] sm:$0xf]  ;;  %v3398_v27 = vld [vmem:[%s4394_s1 + $0x18] sm:$0xf] }
 0x110   : > { %v334_v31 = vsel %vm281_vm6, %v321_v30, 0 }
 0x111   : > { %3377 = vmatmul.mubr.msk.bf16.vlgmr.msra.gmra.mxu0 %vm322_vm10, %v3371_v28  ;;  %3548 = vmatpush3.bf16.msra.mxu1 %v334_v31 }
 0x112   : > { %v515_v33 = vpop.permute.xlu1 %514  ;;  %444 = vmatpush1.bf16.msra.mxu0 %v421_v32  ;;  %3553 = vmatprep.subr.bf16.mxu1 %v3749_v13 }
 0x113   : > { %v517_v34 = vpop.permute.xlu0 %516  ;;  %461 = vmatprep.mubr.bf16.mxu0 %v3747_v0  ;;  %v521_v37 = vsel %vm520_vm11, %v513_v29, %v515_v33 }
 0x114   : > { %v522_v35 = vsel %vm520_vm11, %v515_v33, %v517_v34  ;;  %3550 = vmatmul.mubr.msk.bf16.vlgmr.msra.gmra.mxu1 %vm322_vm10, %v3371_v28  ;;  %v528_v42 = vsel %vm281_vm6, %v521_v37, 0  ;;  %v3402_v37 = vld [vmem:[%s4394_s1 + $0x1c] sm:$0xf] }
 0x115   : > { %3554 = vmatpush3.bf16.msra.mxu1 %v427_v36  ;;  %3383 = vmatprep.subr.msk.bf16.mxu0 %vm281_vm6, %v522_v35 }
 0x116   : > { %v519_v38 = vpop.permute.xlu1 %518  ;;  %3555 = vmatprep.mubr.msk.bf16.mxu1 %vm3750_vm8, %v3749_v13  ;;  %3559 = vmatprep.subr.bf16.mxu1 %v3749_v13 }
 0x117   : > { %v623_v40 = vpop.permute.xlu0 %622  ;;  %v523_v41 = vsel %vm520_vm11, %v517_v34, %v519_v38 }
 0x118   : > { %v534_v45 = vsel %vm281_vm6, %v523_v41, 0  ;;  %v3406_v41 = vld [vmem:[%s4394_s1 + $0x20] sm:$0xf] }
 0x119   : > { %3380 = vmatmul.mubr.msk.bf16.vlgmr.msra.gmra.mxu0 %vm322_vm10, %v297_v39 }
 0x11a   : > { %551 = vmatpush1.bf16.msra.mxu0 %v528_v42  ;;  %v625_v43 = vpop.permute.xlu1 %624  ;;  %568 = vmatprep.mubr.bf16.mxu0 %v3747_v0 }
 0x11b   : > { %v627_v44 = vpop.permute.xlu0 %626  ;;  %v631_v47 = vsel %vm630_vm12, %v623_v40, %v625_v43 }
 0x11c   : > { %v632_v46 = vsel %vm630_vm12, %v625_v43, %v627_v44  ;;  %3556 = vmatmul.mubr.msk.bf16.vlgmr.msra.gmra.mxu1 %vm322_vm10, %v297_v39  ;;  %v638_v51 = vsel %vm281_vm6, %v631_v47, 0 }
 0x11d   : > { %3560 = vmatpush3.bf16.msra.mxu1 %v534_v45  ;;  %3387 = vmatprep.subr.msk.bf16.mxu0 %vm281_vm6, %v632_v46 }
 0x11e   : > { %v629_v48 = vpop.permute.xlu1 %628  ;;  %3561 = vmatprep.mubr.msk.bf16.mxu1 %vm3750_vm8, %v3749_v13  ;;  %3565 = vmatprep.subr.bf16.mxu1 %v3749_v13 }
 0x11f   : > { %v733_v50 = vpop.permute.xlu0 %732  ;;  %v633_v52 = vsel %vm630_vm12, %v627_v44, %v629_v48 }
 0x120   : > { %v644_v55 = vsel %vm281_vm6, %v633_v52, 0 }
 0x121   : > { %3384 = vmatmul.mubr.msk.bf16.vlgmr.msra.gmra.mxu0 %vm322_vm10, %v3382_v49 }
 0x122   : > { %661 = vmatpush1.bf16.msra.mxu0 %v638_v51  ;;  %v735_v53 = vpop.permute.xlu1 %734  ;;  %678 = vmatprep.mubr.bf16.mxu0 %v3747_v0 }
 0x123   : > { %v737_v54 = vpop.permute.xlu0 %736  ;;  %v741_v57 = vsel %vm740_vm13, %v733_v50, %v735_v53 }
 0x124   : > { %v742_v56 = vsel %vm740_vm13, %v735_v53, %v737_v54  ;;  %3562 = vmatmul.mubr.msk.bf16.vlgmr.msra.gmra.mxu1 %vm322_vm10, %v3382_v49  ;;  %v748_v61 = vsel %vm281_vm6, %v741_v57, 0 }
 0x125   : > { %3566 = vmatpush3.bf16.msra.mxu1 %v644_v55  ;;  %3391 = vmatprep.subr.msk.bf16.mxu0 %vm281_vm6, %v742_v56 }
 0x126   : > { %v739_v58 = vpop.permute.xlu1 %738  ;;  %3567 = vmatprep.mubr.msk.bf16.mxu1 %vm3750_vm8, %v3749_v13  ;;  %3571 = vmatprep.subr.bf16.mxu1 %v3749_v13 }
 0x127   : > { %v843_v60 = vpop.permute.xlu0 %842  ;;  %v743_v62 = vsel %vm740_vm13, %v737_v54, %v739_v58 }
 0x128   : > { %v754_v2 = vsel %vm281_vm6, %v743_v62, 0 }
 0x129   : > { %3388 = vmatmul.mubr.msk.bf16.vlgmr.msra.gmra.mxu0 %vm322_vm10, %v3386_v59 }
 0x12a   : > { %771 = vmatpush1.bf16.msra.mxu0 %v748_v61  ;;  %v845_v63 = vpop.permute.xlu1 %844  ;;  %788 = vmatprep.mubr.bf16.mxu0 %v3747_v0 }
 0x12b   : > { %v847_v1 = vpop.permute.xlu0 %846  ;;  %v851_v4 = vsel %vm850_vm14, %v843_v60, %v845_v63 }
 0x12c   : > { %v852_v3 = vsel %vm850_vm14, %v845_v63, %v847_v1  ;;  %3568 = vmatmul.mubr.msk.bf16.vlgmr.msra.gmra.mxu1 %vm322_vm10, %v3386_v59  ;;  %v858_v8 = vsel %vm281_vm6, %v851_v4, 0 }
 0x12d   : > { %3572 = vmatpush3.bf16.msra.mxu1 %v754_v2  ;;  %3395 = vmatprep.subr.msk.bf16.mxu0 %vm281_vm6, %v852_v3 }
 0x12e   : > { %v849_v5 = vpop.permute.xlu1 %848  ;;  %3573 = vmatprep.mubr.msk.bf16.mxu1 %vm3750_vm8, %v3749_v13  ;;  %3577 = vmatprep.subr.bf16.mxu1 %v3749_v13 }
 0x12f   : > { %v953_v7 = vpop.permute.xlu0 %952  ;;  %v853_v9 = vsel %vm850_vm14, %v847_v1, %v849_v5 }
 0x130   : > { %v864_v12 = vsel %vm281_vm6, %v853_v9, 0 }
 0x131   : > { %3392 = vmatmul.mubr.msk.bf16.vlgmr.msra.gmra.mxu0 %vm322_vm10, %v3390_v6 }
 0x132   : > { %881 = vmatpush1.bf16.msra.mxu0 %v858_v8  ;;  %v955_v10 = vpop.permute.xlu1 %954  ;;  %898 = vmatprep.mubr.bf16.mxu0 %v3747_v0 }
 0x133   : > { %v957_v11 = vpop.permute.xlu0 %956  ;;  %v961_v15 = vsel %vm960_vm15, %v953_v7, %v955_v10 }
 0x134   : > { %v962_v14 = vsel %vm960_vm15, %v955_v10, %v957_v11  ;;  %3574 = vmatmul.mubr.msk.bf16.vlgmr.msra.gmra.mxu1 %vm322_vm10, %v3390_v6  ;;  %v968_v19 = vsel %vm281_vm6, %v961_v15, 0 }
 0x135   : > { %3578 = vmatpush3.bf16.msra.mxu1 %v864_v12  ;;  %3399 = vmatprep.subr.msk.bf16.mxu0 %vm281_vm6, %v962_v14 }
 0x136   : > { %v959_v16 = vpop.permute.xlu1 %958  ;;  %3579 = vmatprep.mubr.msk.bf16.mxu1 %vm3750_vm8, %v3749_v13  ;;  %3583 = vmatprep.subr.bf16.mxu1 %v3749_v13 }
 0x137   : > { %v1063_v18 = vpop.permute.xlu0 %1062  ;;  %v963_v20 = vsel %vm960_vm15, %v957_v11, %v959_v16 }
 0x138   : > { %v974_v23 = vsel %vm281_vm6, %v963_v20, 0 }
 0x139   : > { %3396 = vmatmul.mubr.msk.bf16.vlgmr.msra.gmra.mxu0 %vm322_vm10, %v3394_v17 }
 0x13a   : > { %991 = vmatpush1.bf16.msra.mxu0 %v968_v19  ;;  %v1065_v21 = vpop.permute.xlu1 %1064  ;;  %1008 = vmatprep.mubr.bf16.mxu0 %v3747_v0 }
 0x13b   : > { %v1067_v22 = vpop.permute.xlu0 %1066  ;;  %v1071_v25 = vsel %vm1070_vm0, %v1063_v18, %v1065_v21 }
 0x13c   : > { %v1072_v24 = vsel %vm1070_vm0, %v1065_v21, %v1067_v22  ;;  %3580 = vmatmul.mubr.msk.bf16.vlgmr.msra.gmra.mxu1 %vm322_vm10, %v3394_v17  ;;  %v1078_v29 = vsel %vm281_vm6, %v1071_v25, 0 }
 0x13d   : > { %3584 = vmatpush3.bf16.msra.mxu1 %v974_v23  ;;  %3403 = vmatprep.subr.msk.bf16.mxu0 %vm281_vm6, %v1072_v24 }
 0x13e   : > { %v1069_v26 = vpop.permute.xlu1 %1068  ;;  %3585 = vmatprep.mubr.msk.bf16.mxu1 %vm3750_vm8, %v3749_v13  ;;  %3589 = vmatprep.subr.bf16.mxu1 %v3749_v13 }
 0x13f   : > { %v1173_v28 = vpop.permute.xlu0 %1172  ;;  %v1073_v30 = vsel %vm1070_vm0, %v1067_v22, %v1069_v26 }
 0x140   : > { %v1084_v33 = vsel %vm281_vm6, %v1073_v30, 0 }
 0x141   : > { %3400 = vmatmul.mubr.msk.bf16.vlgmr.msra.gmra.mxu0 %vm322_vm10, %v3398_v27 }
 0x142   : > { %1101 = vmatpush1.bf16.msra.mxu0 %v1078_v29  ;;  %v1175_v31 = vpop.permute.xlu1 %1174  ;;  %1118 = vmatprep.mubr.bf16.mxu0 %v3747_v0 }
 0x143   : > { %v1177_v32 = vpop.permute.xlu0 %1176  ;;  %v1181_v35 = vsel %vm4400_vm1, %v1173_v28, %v1175_v31 }
 0x144   : > { %v1182_v34 = vsel %vm4400_vm1, %v1175_v31, %v1177_v32  ;;  %3586 = vmatmul.mubr.msk.bf16.vlgmr.msra.gmra.mxu1 %vm322_vm10, %v3398_v27  ;;  %v1188_v38 = vsel %vm281_vm6, %v1181_v35, 0 }
 0x145   : > { %3590 = vmatpush3.bf16.msra.mxu1 %v1084_v33  ;;  %3407 = vmatprep.subr.msk.bf16.mxu0 %vm281_vm6, %v1182_v34 }
 0x146   : > { %v1179_v36 = vpop.permute.xlu1 %1178  ;;  %3591 = vmatprep.mubr.msk.bf16.mxu1 %vm3750_vm8, %v3749_v13  ;;  %3595 = vmatprep.subr.bf16.mxu1 %v3749_v13 }
 0x147   : > { %v1183_v39 = vsel %vm4400_vm1, %v1177_v32, %v1179_v36  ;;  %vm4043_vm1 = vmor %vm1340_vm7, %vm281_vm6 }
 0x148   : > { %v1194_v40 = vsel %vm281_vm6, %v1183_v39, 0  ;;  %vm4407_vm7 = vmmov %vm4405_vm3 }
 0x149   : > { %3404 = vmatmul.mubr.msk.bf16.vlgmr.msra.gmra.mxu0 %vm322_vm10, %v3402_v37 }
 0x14a   : > { %1211 = vmatpush1.bf16.msra.mxu0 %v1188_v38  ;;  %1228 = vmatprep.mubr.bf16.mxu0 %v3747_v0 }
 0x14c   : > { %3592 = vmatmul.mubr.msk.bf16.vlgmr.msra.gmra.mxu1 %vm322_vm10, %v3402_v37 }
 0x14d   : > { %3596 = vmatpush3.bf16.msra.mxu1 %v1194_v40  ;;  %3597 = vmatprep.mubr.msk.bf16.mxu1 %vm3750_vm8, %v3749_v13 }
 0x14e   : > { %3601 = vmatprep.subr.bf16.mxu1 %v3749_v13 }
 0x151   : > { %3408 = vmatmul.mubr.msk.bf16.vlgmr.msra.gmra.mxu0 %vm322_vm10, %v3406_v41 }
 0x152   : > { %1413 = vmatprep.mubr.bf16.mxu0 %v3747_v0 }
 0x154   : > { %3598 = vmatmul.mubr.msk.bf16.vlgmr.msra.gmra.mxu1 %vm322_vm10, %v3406_v41 }
 0x155   : > { %3603 = vmatprep.mubr.msk.bf16.mxu1 %vm3750_vm8, %v3749_v13 }
 0x1d1   : > { %v370_v42 = vpop.f32.mrf.mxu0 }
 0x1d3   : > { %v372_v43 = vpop.f32.mrf.mxu0 }
 0x1d4   : > { %v411_v44 = vpop.f32.mrf.mxu1 }
 0x1d5   : > { %v374_v45 = vpop.f32.mrf.mxu0 }
 0x1d6   : > { %v3551_v46 = vpop.f32.mrf.mxu1 }
 0x1d7   : > { %v375_v47 = vpop.f32.mrf.mxu0 }
 0x1d8   : > { %v414_v48 = vpop.f32.mrf.mxu1 }
 0x1d9   : > { %v463_v49 = vpop.f32.mrf.mxu0 }
 0x1da   : > { %v3552_v50 = vpop.f32.mrf.mxu1  ;;  %v464_v30 = vadd.f32 %v463_v49, %v370_v42 }
 0x1db   : > { %v465_v51 = vpop.f32.mrf.mxu0  ;;  %v1296_v50 = vlaneseq }
 0x1dc   : > { %v504_v52 = vpop.f32.mrf.mxu1  ;;  %v466_v33 = vadd.f32 %v465_v51, %v372_v43 }
 0x1dd   : > { %v467_v53 = vpop.f32.mrf.mxu0  ;;  %v505_v36 = vadd.f32 %v504_v52, %v411_v44 }
 0x1de   : > { %v3557_v54 = vpop.f32.mrf.mxu1 }
 0x1df   : > { %v468_v55 = vpop.f32.mrf.mxu0 }
 0x1e0   : > { %v507_v56 = vpop.f32.mrf.mxu1 }
 0x1e1   : > { %v570_v57 = vpop.f32.mrf.mxu0 }
 0x1e2   : > { %v3558_v58 = vpop.f32.mrf.mxu1  ;;  %v617_v34 = vadd.f32 %v570_v57, %v464_v30  ;;  %v1297_v57 = vshrl.u32 %v1296_v50, 7 }
 0x1e3   : > { %v572_v59 = vpop.f32.mrf.mxu0 }
 0x1e4   : > { %v611_v60 = vpop.f32.mrf.mxu1  ;;  %v618_v38 = vadd.f32 %v572_v59, %v466_v33 }
 0x1e5   : > { %v574_v61 = vpop.f32.mrf.mxu0  ;;  %v619_v41 = vadd.f32 %v611_v60, %v505_v36  ;;  %v3484_v36 = vld [vmem:[%s4397_s4 + $0x10] sm:$0xff] }
 0x1e6   : > { %v3563_v62 = vpop.f32.mrf.mxu1 }
 0x1e7   : > { %v575_v63 = vpop.f32.mrf.mxu0 }
 0x1e8   : > { %v614_v1 = vpop.f32.mrf.mxu1 }
 0x1e9   : > { %v680_v2 = vpop.f32.mrf.mxu0 }
 0x1ea   : > { %v3564_v3 = vpop.f32.mrf.mxu1  ;;  %v727_v39 = vadd.f32 %v680_v2, %v617_v34  ;;  %v1284_v2 = vpop.permute.xlu0 %1283 }
 0x1eb   : > { %v682_v4 = vpop.f32.mrf.mxu0 }
 0x1ec   : > { %v721_v5 = vpop.f32.mrf.mxu1  ;;  %v728_v46 = vadd.f32 %v682_v4, %v618_v38 }
 0x1ed   : > { %v684_v6 = vpop.f32.mrf.mxu0  ;;  %v729_v53 = vadd.f32 %v721_v5, %v619_v41 }
 0x1ee   : > { %v3569_v7 = vpop.f32.mrf.mxu1  ;;  %v1298_v6 = vsub.s32 0, %v1297_v57 }
 0x1ef   : > { %v685_v8 = vpop.f32.mrf.mxu0  ;;  %v1302_v7 = vsub.s32 1, %v1297_v57 }
 0x1f0   : > { %v724_v9 = vpop.f32.mrf.mxu1 }
 0x1f1   : > { %v790_v10 = vpop.f32.mrf.mxu0 }
 0x1f2   : > { %v3570_v11 = vpop.f32.mrf.mxu1  ;;  %v837_v47 = vadd.f32 %v790_v10, %v727_v39  ;;  %v294_v10 = vld [vmem:[%s4398_s5] sm:$0x7] }
 0x1f3   : > { %v792_v12 = vpop.f32.mrf.mxu0 }
 0x1f4   : > { %v831_v14 = vpop.f32.mrf.mxu1  ;;  %v838_v42 = vadd.f32 %v792_v12, %v728_v46 }
 0x1f5   : > { %v794_v15 = vpop.f32.mrf.mxu0  ;;  %v839_v43 = vadd.f32 %v831_v14, %v729_v53 }
 0x1f6   : > { %v3575_v16 = vpop.f32.mrf.mxu1  ;;  %v1306_v15 = vsub.s32 2, %v1297_v57 }
 0x1f7   : > { %v795_v17 = vpop.f32.mrf.mxu0 }
 0x1f8   : > { %v834_v18 = vpop.f32.mrf.mxu1 }
 0x1f9   : > { %v900_v19 = vpop.f32.mrf.mxu0 }
 0x1fa   : > { %v3576_v20 = vpop.f32.mrf.mxu1  ;;  %v947_v49 = vadd.f32 %v900_v19, %v837_v47 }
 0x1fb   : > { %v902_v21 = vpop.f32.mrf.mxu0 }
 0x1fc   : > { %v941_v22 = vpop.f32.mrf.mxu1  ;;  %v948_v56 = vadd.f32 %v902_v21, %v838_v42  ;;  %v4021_v21 = vrot.slane %v294_v10, %v1298_v6 }
 0x1fd   : > { %v904_v23 = vpop.f32.mrf.mxu0  ;;  %v949_v58 = vadd.f32 %v941_v22, %v839_v43  ;;  %v4023_v22 = vrot.slane %v294_v10, %v1302_v7  ;;  %v1345_v7 = vld [vmem:[%s4395_s2] sm:$0xf] }
 0x1fe   : > { %v3581_v24 = vpop.f32.mrf.mxu1 }
 0x1ff   : > { %v905_v25 = vpop.f32.mrf.mxu0 }
 0x200   : > { %v944_v26 = vpop.f32.mrf.mxu1 }
 0x201   : > { %v1010_v27 = vpop.f32.mrf.mxu0 }
 0x202   : > { %v3582_v28 = vpop.f32.mrf.mxu1  ;;  %v1057_v44 = vadd.f32 %v1010_v27, %v947_v49  ;;  %v4026_v27 = vrot.slane %v294_v10, %v1306_v15  ;;  %v3451_v49 = vld [vmem:[%s4397_s4 + $0x8] sm:$0xff] }
 0x203   : > { %v1012_v29 = vpop.f32.mrf.mxu0 }
 0x204   : > { %v1051_v31 = vpop.f32.mrf.mxu1  ;;  %v1058_v60 = vadd.f32 %v1012_v29, %v948_v56 }
 0x205   : > { %v1014_v32 = vpop.f32.mrf.mxu0  ;;  %v1059_v63 = vadd.f32 %v1051_v31, %v949_v58 }
 0x206   : > { %v3587_v35 = vpop.f32.mrf.mxu1 }
 0x207   : > { %v1015_v37 = vpop.f32.mrf.mxu0 }
 0x208   : > { %v1054_v40 = vpop.f32.mrf.mxu1 }
 0x209   : > { %v1120_v45 = vpop.f32.mrf.mxu0 }
 0x20a   : > { %v3588_v48 = vpop.f32.mrf.mxu1  ;;  %v1167_v61 = vadd.f32 %v1120_v45, %v1057_v44 }
 0x20b   : > { %v1122_v54 = vpop.f32.mrf.mxu0 }
 0x20c   : > { %v1161_v55 = vpop.f32.mrf.mxu1  ;;  %v1168_v3 = vadd.f32 %v1122_v54, %v1058_v60  ;;  %v3412_v60 = vld [vmem:[%s4395_s2 + $0x4] sm:$0xf] }
 0x20d   : > { %v1124_v51 = vpop.f32.mrf.mxu0  ;;  %v1169_v8 = vadd.f32 %v1161_v55, %v1059_v63 }
 0x20e   : > { %v3593_v52 = vpop.f32.mrf.mxu1 }
 0x20f   : > { %v1125_v59 = vpop.f32.mrf.mxu0 }
 0x210   : > { %v1164_v62 = vpop.f32.mrf.mxu1 }
 0x211   : > { %v1230_v1 = vpop.f32.mrf.mxu0 }
 0x212   : > { %v1277_v4 = vadd.f32 %v1230_v1, %v1167_v61  ;;  %v3594_v5 = vpop.f32.mrf.mxu1 }
 0x213   : > { %v1232_v9 = vpop.f32.mrf.mxu0 }
 0x214   : > { %v1278_v11 = vadd.f32 %v1232_v9, %v1168_v3  ;;  %v1286_v12 = vadd.f32 %v1284_v2, %v1277_v4  ;;  %v1271_v14 = vpop.f32.mrf.mxu1 }
 0x215   : > { %v1279_v16 = vadd.f32 %v1271_v14, %v1169_v8  ;;  %v1234_v17 = vpop.f32.mrf.mxu0 }
 0x216   : > { %v1287_v18 = vadd.f32 %v1284_v2, %v1278_v11  ;;  %v1289_v19 = vmax.f32 %v1286_v12, 0.0  ;;  %v3599_v20 = vpop.f32.mrf.mxu1 }
 0x217   : > { %v1288_v23 = vadd.f32 %v1284_v2, %v1279_v16  ;;  %v1235_v24 = vpop.f32.mrf.mxu0 }
 0x218   : > { %v1290_v25 = vmax.f32 %v1287_v18, 0.0  ;;  %1292 = vst [vmem:[%s4019_s25] sm:$0xff] %v1289_v19  ;;  %v1274_v26 = vpop.f32.mrf.mxu1  ;;  %v1311_v30 = vmul.f32 %v4021_v21, %v1289_v19  ;;  %v3423_v18 = vld [vmem:[%s4395_s2 + $0x8] sm:$0xf] }
 0x219   : > { %v1291_v28 = vmax.f32 %v1288_v23, 0.0 }
 0x21a   : > { %1293 = vst [vmem:[%s4019_s25 + $0x8] sm:$0xff] %v1290_v25  ;;  %v3600_v29 = vpop.f32.mrf.mxu1  ;;  %v1312_v31 = vmul.f32 %v4023_v22, %v1290_v25 }
 0x21b   : > { %1294 = vst [vmem:[%s4019_s25 + $0x10] sm:$0xff] %v1291_v28  ;;  %v1313_v33 = vmul.f32 %v4026_v27, %v1291_v28 }
 0x21c   : > { %v3489_v32 = vpack.c.bf16 %v1312_v31, %v1311_v30  ;;  %v3427_v31 = vld [vmem:[%s4395_s2 + $0xc] sm:$0xf] }
 0x21d   : > { %v3490_v34 = vpack.c.bf16 %v1313_v33, %v1313_v33 }
 0x21e   : > { %1325 = vrot.lane.b32.xlu1 %v3489_v32, %s3748_s27 }
 0x222   : > { %1327 = vrot.lane.b32.xlu1 %v3490_v34, %s3748_s27 }
 0x290   : > { %v1326_v35 = vpop.permute.xlu1 %1325 }
 0x291   : > { %v1329_v37 = vrot.slane %v1326_v35, 4 }
 0x293   : > { %v1331_v38 = vsel %vm279_vm2, %v1329_v37, %v1326_v35 }
 0x294   : > { %1339 = vst.msk [vmem:[#allocation2] sm:$0xff] %vm4035_vm5, %v1331_v38  ;;  %v1328_v39 = vpop.permute.xlu1 %1327 }
 0x295   : > { %v1330_v40 = vrot.slane %v1328_v39, 4 }
 0x297   : > { %v1332_v45 = vsel %vm281_vm6, %v1329_v37, %v1330_v40 }
 0x298   : > { %v1333_v46 = vsel %vm279_vm2, %v1332_v45, %v1328_v39 }
 0x299   : > { %1342 = vst.msk [vmem:[#allocation2 + $0x8] sm:$0xff] %vm4043_vm1, %v1333_v46  ;;  %v3431_v46 = vld [vmem:[%s4395_s2 + $0x10] sm:$0xf] }
 0x29b   : > { %v4051_v47 = vld [vmem:[#allocation2] sm:$0xff] }
 0x29c   : > { %v3413_v48 = vcombine.low %v4051_v47, %v4051_v47  ;;  %v3414_v50 = vcombine.high %v4051_v47, %v4051_v47 }
 0x29e   : > { %1358 = vrot.lane.b32.xlu0 %v3413_v48, %s3751_s28  ;;  %1360 = vrot.lane.b32.xlu1 %v3414_v50, %s3751_s28  ;;  %v1466_v63 = vsel %vm281_vm6, %v3413_v48, 0 }
 0x2a0   : > { %v4059_v53 = vld [vmem:[#allocation2 + $0x8] sm:$0xff] }
 0x2a1   : > { %v3416_v54 = vcombine.high %v4059_v53, %v4059_v53  ;;  %v3415_v42 = vcombine.low %v4059_v53, %v4059_v53 }
 0x2a3   : > { %1364 = vrot.lane.b32.xlu1 %v3416_v54, %s3751_s28  ;;  %1362 = vrot.lane.b32.xlu0 %v3415_v42, %s3751_s28  ;;  %v1472_v1 = vsel %vm281_vm6, %v3415_v42, 0 }
 0x2a7   : > { %1559 = vrot.lane.b32.xlu1 %v3414_v50, %s3752_s29  ;;  %1557 = vrot.lane.b32.xlu0 %v3413_v48, %s3752_s29 }
 0x2ab   : > { %1563 = vrot.lane.b32.xlu1 %v3416_v54, %s3752_s29  ;;  %1561 = vrot.lane.b32.xlu0 %v3415_v42, %s3752_s29 }
 0x2af   : > { %1668 = vrot.lane.b32.xlu1 %v3414_v50, %s3753_s30  ;;  %1666 = vrot.lane.b32.xlu0 %v3413_v48, %s3753_s30 }
 0x2b3   : > { %1672 = vrot.lane.b32.xlu1 %v3416_v54, %s3753_s30  ;;  %1670 = vrot.lane.b32.xlu0 %v3415_v42, %s3753_s30 }
 0x2b7   : > { %1777 = vrot.lane.b32.xlu1 %v3414_v50, %s3754_s7  ;;  %1775 = vrot.lane.b32.xlu0 %v3413_v48, %s3754_s7 }
 0x2bb   : > { %1781 = vrot.lane.b32.xlu1 %v3416_v54, %s3754_s7  ;;  %1779 = vrot.lane.b32.xlu0 %v3415_v42, %s3754_s7 }
 0x2bf   : > { %1886 = vrot.lane.b32.xlu1 %v3414_v50, %s3755_s8  ;;  %1884 = vrot.lane.b32.xlu0 %v3413_v48, %s3755_s8 }
 0x2c3   : > { %1890 = vrot.lane.b32.xlu1 %v3416_v54, %s3755_s8  ;;  %1888 = vrot.lane.b32.xlu0 %v3415_v42, %s3755_s8 }
 0x2c7   : > { %1995 = vrot.lane.b32.xlu1 %v3414_v50, %s3756_s9  ;;  %1993 = vrot.lane.b32.xlu0 %v3413_v48, %s3756_s9 }
 0x2cb   : > { %1999 = vrot.lane.b32.xlu1 %v3416_v54, %s3756_s9  ;;  %1997 = vrot.lane.b32.xlu0 %v3415_v42, %s3756_s9 }
 0x2cf   : > { %2104 = vrot.lane.b32.xlu1 %v3414_v50, %s3757_s10  ;;  %2102 = vrot.lane.b32.xlu0 %v3413_v48, %s3757_s10 }
 0x2d3   : > { %2108 = vrot.lane.b32.xlu1 %v3416_v54, %s3757_s10  ;;  %2106 = vrot.lane.b32.xlu0 %v3415_v42, %s3757_s10 }
 0x2d7   : > { %2213 = vrot.lane.b32.xlu1 %v3414_v50, %s3758_s11  ;;  %2211 = vrot.lane.b32.xlu0 %v3413_v48, %s3758_s11 }
 0x2db   : > { %2217 = vrot.lane.b32.xlu1 %v3416_v54, %s3758_s11  ;;  %2215 = vrot.lane.b32.xlu0 %v3415_v42, %s3758_s11 }
 0x2df   : > { %2322 = vperm.xlu0 %3731, %v3451_v49  }
 0x310   : > { %v1359_v55 = vpop.permute.xlu0 %1358  ;;  %v1361_v43 = vpop.permute.xlu1 %1360 }
 0x311   : > { %v1366_v51 = vsel %vm318_vm9, %v1359_v55, %v1361_v43  ;;  %v4173_v55 = vld [vmem:[#allocation2 + $0x10] sm:$0xff] }
 0x312   : > { %v1373_v58 = vsel %vm281_vm6, %v1366_v51, 0 }
 0x315   : > { %v1363_v56 = vpop.permute.xlu0 %1362  ;;  %v1365_v44 = vpop.permute.xlu1 %1364 }
 0x316   : > { %v1367_v52 = vsel %vm318_vm9, %v1361_v43, %v1363_v56  ;;  %v1368_v57 = vsel %vm318_vm9, %v1363_v56, %v1365_v44  ;;  %v3435_v44 = vld [vmem:[%s4395_s2 + $0x14] sm:$0xf] }
 0x317   : > { %v1379_v59 = vsel %vm281_vm6, %v1368_v57, 0  ;;  %3417 = vmatprep.subr.msk.bf16.mxu0 %vm281_vm6, %v1367_v52 }
 0x318   : > { %1396 = vmatpush1.bf16.msra.mxu0 %v1373_v58  ;;  %3602 = vmatpush3.bf16.msra.mxu1 %v1379_v59 }
 0x319   : > { %v1558_v61 = vpop.permute.xlu0 %1557  ;;  %3420 = vmatprep.subr.msk.bf16.mxu0 %vm281_vm6, %v3414_v50  ;;  %v1560_v62 = vpop.permute.xlu1 %1559  ;;  %3607 = vmatprep.subr.bf16.mxu1 %v3749_v13 }
 0x31a   : > { %v1565_v5 = vsel %vm520_vm11, %v1558_v61, %v1560_v62 }
 0x31b   : > { %3418 = vmatmul.mubr.msk.bf16.vlgmr.msra.gmra.mxu0 %vm322_vm10, %v3412_v60  ;;  %3604 = vmatmul.mubr.msk.bf16.vlgmr.msra.gmra.mxu1 %vm322_vm10, %v3412_v60  ;;  %v1572_v10 = vsel %vm281_vm6, %v1565_v5, 0 }
 0x31c   : > { %1489 = vmatpush1.bf16.msra.mxu0 %v1466_v63  ;;  %3608 = vmatpush3.bf16.msra.mxu1 %v1472_v1 }
 0x31d   : > { %v1562_v2 = vpop.permute.xlu0 %1561  ;;  %v1564_v3 = vpop.permute.xlu1 %1563  ;;  %1506 = vmatprep.mubr.bf16.mxu0 %v3747_v0  ;;  %3609 = vmatprep.mubr.msk.bf16.mxu1 %vm3750_vm8, %v3749_v13 }
 0x31e   : > { %v1566_v4 = vsel %vm520_vm11, %v1560_v62, %v1562_v2  ;;  %3613 = vmatprep.subr.bf16.mxu1 %v3749_v13  ;;  %v1567_v6 = vsel %vm520_vm11, %v1562_v2, %v1564_v3  ;;  %v3439_v2 = vld [vmem:[%s4395_s2 + $0x18] sm:$0xf] }
 0x31f   : > { %3424 = vmatprep.subr.msk.bf16.mxu0 %vm281_vm6, %v1566_v4  ;;  %v1578_v11 = vsel %vm281_vm6, %v1567_v6, 0 }
 0x321   : > { %v1667_v8 = vpop.permute.xlu0 %1666  ;;  %v1669_v9 = vpop.permute.xlu1 %1668 }
 0x322   : > { %v1674_v16 = vsel %vm630_vm12, %v1667_v8, %v1669_v9 }
 0x323   : > { %3421 = vmatmul.mubr.msk.bf16.vlgmr.msra.gmra.mxu0 %vm322_vm10, %v1345_v7  ;;  %3610 = vmatmul.mubr.msk.bf16.vlgmr.msra.gmra.mxu1 %vm322_vm10, %v1345_v7  ;;  %v1681_v23 = vsel %vm281_vm6, %v1674_v16, 0  ;;  %v3447_v16 = vld [vmem:[%s4395_s2 + $0x20] sm:$0xf] }
 0x324   : > { %1595 = vmatpush1.bf16.msra.mxu0 %v1572_v10  ;;  %3614 = vmatpush3.bf16.msra.mxu1 %v1578_v11 }
 0x325   : > { %v1671_v12 = vpop.permute.xlu0 %1670  ;;  %v1673_v14 = vpop.permute.xlu1 %1672  ;;  %1612 = vmatprep.mubr.bf16.mxu0 %v3747_v0  ;;  %3615 = vmatprep.mubr.msk.bf16.mxu1 %vm3750_vm8, %v3749_v13 }
 0x326   : > { %v1675_v15 = vsel %vm630_vm12, %v1669_v9, %v1671_v12  ;;  %3619 = vmatprep.subr.bf16.mxu1 %v3749_v13  ;;  %v1676_v17 = vsel %vm630_vm12, %v1671_v12, %v1673_v14  ;;  %v3443_v12 = vld [vmem:[%s4395_s2 + $0x1c] sm:$0xf] }
 0x327   : > { %3428 = vmatprep.subr.msk.bf16.mxu0 %vm281_vm6, %v1675_v15  ;;  %v1687_v24 = vsel %vm281_vm6, %v1676_v17, 0 }
 0x329   : > { %v1776_v19 = vpop.permute.xlu0 %1775  ;;  %v1778_v20 = vpop.permute.xlu1 %1777 }
 0x32a   : > { %v1783_v29 = vsel %vm740_vm13, %v1776_v19, %v1778_v20 }
 0x32b   : > { %3425 = vmatmul.mubr.msk.bf16.vlgmr.msra.gmra.mxu0 %vm322_vm10, %v3423_v18  ;;  %3616 = vmatmul.mubr.msk.bf16.vlgmr.msra.gmra.mxu1 %vm322_vm10, %v3423_v18  ;;  %v1790_v34 = vsel %vm281_vm6, %v1783_v29, 0 }
 0x32c   : > { %1704 = vmatpush1.bf16.msra.mxu0 %v1681_v23  ;;  %3620 = vmatpush3.bf16.msra.mxu1 %v1687_v24 }
 0x32d   : > { %v1780_v25 = vpop.permute.xlu0 %1779  ;;  %v1782_v26 = vpop.permute.xlu1 %1781  ;;  %1721 = vmatprep.mubr.bf16.mxu0 %v3747_v0  ;;  %3621 = vmatprep.mubr.msk.bf16.mxu1 %vm3750_vm8, %v3749_v13 }
 0x32e   : > { %v1784_v28 = vsel %vm740_vm13, %v1778_v20, %v1780_v25  ;;  %3625 = vmatprep.subr.bf16.mxu1 %v3749_v13  ;;  %v1785_v30 = vsel %vm740_vm13, %v1780_v25, %v1782_v26 }
 0x32f   : > { %3432 = vmatprep.subr.msk.bf16.mxu0 %vm281_vm6, %v1784_v28  ;;  %v1796_v35 = vsel %vm281_vm6, %v1785_v30, 0 }
 0x331   : > { %v1885_v32 = vpop.permute.xlu0 %1884  ;;  %v1887_v33 = vpop.permute.xlu1 %1886 }
 0x332   : > { %v1892_v40 = vsel %vm850_vm14, %v1885_v32, %v1887_v33 }
 0x333   : > { %3429 = vmatmul.mubr.msk.bf16.vlgmr.msra.gmra.mxu0 %vm322_vm10, %v3427_v31  ;;  %3622 = vmatmul.mubr.msk.bf16.vlgmr.msra.gmra.mxu1 %vm322_vm10, %v3427_v31 }
 0x334   : > { %1813 = vmatpush1.bf16.msra.mxu0 %v1790_v34  ;;  %3626 = vmatpush3.bf16.msra.mxu1 %v1796_v35 }
 0x335   : > { %v1889_v37 = vpop.permute.xlu0 %1888  ;;  %v1891_v38 = vpop.permute.xlu1 %1890  ;;  %1830 = vmatprep.mubr.bf16.mxu0 %v3747_v0  ;;  %3627 = vmatprep.mubr.msk.bf16.mxu1 %vm3750_vm8, %v3749_v13  ;;  %v1899_v0 = vsel %vm281_vm6, %v1892_v40, 0 }
 0x336   : > { %v1893_v39 = vsel %vm850_vm14, %v1887_v33, %v1889_v37  ;;  %3631 = vmatprep.subr.bf16.mxu1 %v3749_v13  ;;  %v1894_v45 = vsel %vm850_vm14, %v1889_v37, %v1891_v38 }
 0x337   : > { %3436 = vmatprep.subr.msk.bf16.mxu0 %vm281_vm6, %v1893_v39  ;;  %v1905_v54 = vsel %vm281_vm6, %v1894_v45, 0 }
 0x339   : > { %v1994_v48 = vpop.permute.xlu0 %1993  ;;  %v1996_v50 = vpop.permute.xlu1 %1995 }
 0x33a   : > { %v2001_v51 = vsel %vm960_vm15, %v1994_v48, %v1996_v50 }
 0x33b   : > { %3433 = vmatmul.mubr.msk.bf16.vlgmr.msra.gmra.mxu0 %vm322_vm10, %v3431_v46  ;;  %3628 = vmatmul.mubr.msk.bf16.vlgmr.msra.gmra.mxu1 %vm322_vm10, %v3431_v46  ;;  %v2008_v58 = vsel %vm281_vm6, %v2001_v51, 0 }
 0x33c   : > { %1922 = vmatpush1.bf16.msra.mxu0 %v1899_v0  ;;  %3632 = vmatpush3.bf16.msra.mxu1 %v1905_v54 }
 0x33d   : > { %v1998_v42 = vpop.permute.xlu0 %1997  ;;  %v2000_v49 = vpop.permute.xlu1 %1999  ;;  %1939 = vmatprep.mubr.bf16.mxu0 %v4173_v55  ;;  %3633 = vmatprep.mubr.msk.bf16.mxu1 %vm3750_vm8, %v3749_v13 }
 0x33e   : > { %v2002_v43 = vsel %vm960_vm15, %v1996_v50, %v1998_v42  ;;  %3637 = vmatprep.subr.bf16.mxu1 %v3749_v13  ;;  %v2003_v56 = vsel %vm960_vm15, %v1998_v42, %v2000_v49 }
 0x33f   : > { %3440 = vmatprep.subr.msk.bf16.mxu0 %vm281_vm6, %v2002_v43  ;;  %v2014_v59 = vsel %vm281_vm6, %v2003_v56, 0 }
 0x341   : > { %v2103_v52 = vpop.permute.xlu0 %2102  ;;  %v2105_v57 = vpop.permute.xlu1 %2104 }
 0x342   : > { %v2110_v63 = vsel %vm1070_vm0, %v2103_v52, %v2105_v57 }
 0x343   : > { %3437 = vmatmul.mubr.msk.bf16.vlgmr.msra.gmra.mxu0 %vm322_vm10, %v3435_v44  ;;  %3634 = vmatmul.mubr.msk.bf16.vlgmr.msra.gmra.mxu1 %vm322_vm10, %v3435_v44  ;;  %v2117_v5 = vsel %vm281_vm6, %v2110_v63, 0 }
 0x344   : > { %2031 = vmatpush1.bf16.msra.mxu0 %v2008_v58  ;;  %3638 = vmatpush3.bf16.msra.mxu1 %v2014_v59 }
 0x345   : > { %v2107_v60 = vpop.permute.xlu0 %2106  ;;  %v2109_v61 = vpop.permute.xlu1 %2108  ;;  %2048 = vmatprep.mubr.bf16.mxu0 %v4173_v55  ;;  %3639 = vmatprep.mubr.msk.bf16.mxu1 %vm3750_vm8, %v3749_v13 }
 0x346   : > { %v2111_v62 = vsel %vm1070_vm0, %v2105_v57, %v2107_v60  ;;  %3643 = vmatprep.subr.bf16.mxu1 %v3749_v13  ;;  %v2112_v1 = vsel %vm1070_vm0, %v2107_v60, %v2109_v61 }
 0x347   : > { %3444 = vmatprep.subr.msk.bf16.mxu0 %vm281_vm6, %v2111_v62  ;;  %v2123_v6 = vsel %vm281_vm6, %v2112_v1, 0 }
 0x349   : > { %v2212_v3 = vpop.permute.xlu0 %2211  ;;  %v2214_v4 = vpop.permute.xlu1 %2213 }
 0x34a   : > { %v2219_v10 = vsel %vm4406_vm4, %v2212_v3, %v2214_v4 }
 0x34b   : > { %3441 = vmatmul.mubr.msk.bf16.vlgmr.msra.gmra.mxu0 %vm322_vm10, %v3439_v2  ;;  %3640 = vmatmul.mubr.msk.bf16.vlgmr.msra.gmra.mxu1 %vm322_vm10, %v3439_v2  ;;  %v2226_v14 = vsel %vm281_vm6, %v2219_v10, 0 }
 0x34c   : > { %2140 = vmatpush1.bf16.msra.mxu0 %v2117_v5  ;;  %3644 = vmatpush3.bf16.msra.mxu1 %v2123_v6 }
 0x34d   : > { %v2216_v7 = vpop.permute.xlu0 %2215  ;;  %v2218_v8 = vpop.permute.xlu1 %2217  ;;  %2157 = vmatprep.mubr.bf16.mxu0 %v4173_v55  ;;  %3645 = vmatprep.mubr.msk.bf16.mxu1 %vm3750_vm8, %v3749_v13 }
 0x34e   : > { %v2220_v9 = vsel %vm4405_vm3, %v2214_v4, %v2216_v7  ;;  %3649 = vmatprep.subr.bf16.mxu1 %v3749_v13  ;;  %v2221_v11 = vsel %vm4407_vm7, %v2216_v7, %v2218_v8 }
 0x34f   : > { %3448 = vmatprep.subr.msk.bf16.mxu0 %vm281_vm6, %v2220_v9  ;;  %v2232_v15 = vsel %vm281_vm6, %v2221_v11, 0 }
 0x353   : > { %3445 = vmatmul.mubr.msk.bf16.vlgmr.msra.gmra.mxu0 %vm322_vm10, %v3443_v12  ;;  %3646 = vmatmul.mubr.msk.bf16.vlgmr.msra.gmra.mxu1 %vm322_vm10, %v3443_v12 }
 0x354   : > { %2249 = vmatpush1.bf16.msra.mxu0 %v2226_v14  ;;  %3650 = vmatpush3.bf16.msra.mxu1 %v2232_v15 }
 0x355   : > { %2266 = vmatprep.mubr.bf16.mxu0 %v4173_v55  ;;  %3651 = vmatprep.mubr.msk.bf16.mxu1 %vm3750_vm8, %v3749_v13 }
 0x356   : > { %3655 = vmatprep.subr.bf16.mxu1 %v3749_v13 }
 0x35b   : > { %3449 = vmatmul.mubr.msk.bf16.vlgmr.msra.gmra.mxu0 %vm322_vm10, %v3447_v16  ;;  %3652 = vmatmul.mubr.msk.bf16.vlgmr.msra.gmra.mxu1 %vm322_vm10, %v3447_v16  ;;  %vm4410_vm10 = vmmov %vm4405_vm3 }
 0x35c   : > { %2434 = vmatprep.mubr.bf16.mxu0 %v4173_v55  ;;  %3657 = vmatprep.mubr.msk.bf16.mxu1 %vm3750_vm8, %v3749_v13 }
 0x3db   : > { %v1415_v17 = vpop.f32.mrf.mxu0  ;;  %v1456_v18 = vpop.f32.mrf.mxu1 }
 0x3dd   : > { %v1417_v19 = vpop.f32.mrf.mxu0  ;;  %v3605_v20 = vpop.f32.mrf.mxu1 }
 0x3df   : > { %v1419_v23 = vpop.f32.mrf.mxu0  ;;  %v1459_v24 = vpop.f32.mrf.mxu1 }
 0x3e1   : > { %v1420_v25 = vpop.f32.mrf.mxu0  ;;  %v3606_v26 = vpop.f32.mrf.mxu1 }
 0x3e3   : > { %v1508_v28 = vpop.f32.mrf.mxu0  ;;  %v1549_v29 = vpop.f32.mrf.mxu1 }
 0x3e4   : > { %v1509_v14 = vadd.f32 %v1508_v28, %v1415_v17  ;;  %v1550_v15 = vadd.f32 %v1549_v29, %v1456_v18 }
 0x3e5   : > { %v1510_v30 = vpop.f32.mrf.mxu0  ;;  %v3611_v31 = vpop.f32.mrf.mxu1 }
 0x3e6   : > { %v1511_v23 = vadd.f32 %v1510_v30, %v1417_v19 }
 0x3e7   : > { %v1512_v32 = vpop.f32.mrf.mxu0  ;;  %v1552_v33 = vpop.f32.mrf.mxu1 }
 0x3e9   : > { %v1513_v34 = vpop.f32.mrf.mxu0  ;;  %v3612_v35 = vpop.f32.mrf.mxu1 }
 0x3eb   : > { %v1614_v37 = vpop.f32.mrf.mxu0  ;;  %v1655_v38 = vpop.f32.mrf.mxu1 }
 0x3ec   : > { %v1661_v24 = vadd.f32 %v1614_v37, %v1509_v14  ;;  %v1663_v25 = vadd.f32 %v1655_v38, %v1550_v15 }
 0x3ed   : > { %v1616_v39 = vpop.f32.mrf.mxu0  ;;  %v3617_v40 = vpop.f32.mrf.mxu1 }
 0x3ee   : > { %v1662_v32 = vadd.f32 %v1616_v39, %v1511_v23 }
 0x3ef   : > { %v1618_v45 = vpop.f32.mrf.mxu0  ;;  %v1658_v46 = vpop.f32.mrf.mxu1 }
 0x3f1   : > { %v1619_v48 = vpop.f32.mrf.mxu0  ;;  %v3618_v50 = vpop.f32.mrf.mxu1 }
 0x3f3   : > { %v1723_v0 = vpop.f32.mrf.mxu0  ;;  %v1764_v54 = vpop.f32.mrf.mxu1 }
 0x3f4   : > { %v1770_v33 = vadd.f32 %v1723_v0, %v1661_v24  ;;  %v1772_v34 = vadd.f32 %v1764_v54, %v1663_v25 }
 0x3f5   : > { %v1725_v42 = vpop.f32.mrf.mxu0  ;;  %v3623_v49 = vpop.f32.mrf.mxu1 }
 0x3f6   : > { %v1771_v45 = vadd.f32 %v1725_v42, %v1662_v32  ;;  %v2323_v42 = vpop.permute.xlu0 %2322 }
 0x3f7   : > { %v1727_v43 = vpop.f32.mrf.mxu0  ;;  %v1767_v51 = vpop.f32.mrf.mxu1 }
 0x3f9   : > { %v1728_v56 = vpop.f32.mrf.mxu0  ;;  %v3624_v44 = vpop.f32.mrf.mxu1 }
 0x3fb   : > { %v1832_v52 = vpop.f32.mrf.mxu0  ;;  %v1873_v57 = vpop.f32.mrf.mxu1 }
 0x3fc   : > { %v1879_v46 = vadd.f32 %v1832_v52, %v1770_v33  ;;  %v1881_v48 = vadd.f32 %v1873_v57, %v1772_v34 }
 0x3fd   : > { %v1834_v58 = vpop.f32.mrf.mxu0  ;;  %v3629_v59 = vpop.f32.mrf.mxu1 }
 0x3fe   : > { %v1880_v43 = vadd.f32 %v1834_v58, %v1771_v45 }
 0x3ff   : > { %v1836_v60 = vpop.f32.mrf.mxu0  ;;  %v1876_v61 = vpop.f32.mrf.mxu1 }
 0x401   : > { %v1837_v62 = vpop.f32.mrf.mxu0  ;;  %v3630_v63 = vpop.f32.mrf.mxu1 }
 0x403   : > { %v1941_v1 = vpop.f32.mrf.mxu0  ;;  %v1982_v2 = vpop.f32.mrf.mxu1 }
 0x404   : > { %v1988_v17 = vadd.f32 %v1941_v1, %v1879_v46  ;;  %v1990_v18 = vadd.f32 %v1982_v2, %v1881_v48  ;;  %v3454_v46 = vld [vmem:[%s4396_s3 + $0x4] sm:$0xf] }
 0x405   : > { %v1943_v3 = vpop.f32.mrf.mxu0  ;;  %v3635_v4 = vpop.f32.mrf.mxu1 }
 0x406   : > { %v1989_v19 = vadd.f32 %v1943_v3, %v1880_v43 }
 0x407   : > { %v1945_v5 = vpop.f32.mrf.mxu0  ;;  %v1985_v6 = vpop.f32.mrf.mxu1 }
 0x409   : > { %v1946_v7 = vpop.f32.mrf.mxu0  ;;  %v3636_v8 = vpop.f32.mrf.mxu1 }
 0x40b   : > { %v2050_v9 = vpop.f32.mrf.mxu0  ;;  %v2091_v10 = vpop.f32.mrf.mxu1 }
 0x40c   : > { %v2097_v30 = vadd.f32 %v2050_v9, %v1988_v17  ;;  %v2099_v37 = vadd.f32 %v2091_v10, %v1990_v18  ;;  %v2365_v18 = vld [vmem:[%s4396_s3] sm:$0xf] }
 0x40d   : > { %v2052_v11 = vpop.f32.mrf.mxu0  ;;  %v3641_v12 = vpop.f32.mrf.mxu1 }
 0x40e   : > { %v2098_v39 = vadd.f32 %v2052_v11, %v1989_v19 }
 0x40f   : > { %v2054_v16 = vpop.f32.mrf.mxu0  ;;  %v2094_v20 = vpop.f32.mrf.mxu1 }
 0x411   : > { %v2055_v26 = vpop.f32.mrf.mxu0  ;;  %v3642_v31 = vpop.f32.mrf.mxu1 }
 0x413   : > { %v2159_v35 = vpop.f32.mrf.mxu0  ;;  %v2200_v40 = vpop.f32.mrf.mxu1 }
 0x414   : > { %v2206_v0 = vadd.f32 %v2159_v35, %v2097_v30  ;;  %v2208_v54 = vadd.f32 %v2200_v40, %v2099_v37 }
 0x415   : > { %v2161_v50 = vpop.f32.mrf.mxu0  ;;  %v3647_v49 = vpop.f32.mrf.mxu1 }
 0x416   : > { %v2207_v52 = vadd.f32 %v2161_v50, %v2098_v39  ;;  %v3463_v39 = vld [vmem:[%s4396_s3 + $0x8] sm:$0xf] }
 0x417   : > { %v2163_v28 = vpop.f32.mrf.mxu0  ;;  %v2203_v29 = vpop.f32.mrf.mxu1 }
 0x419   : > { %v2164_v38 = vpop.f32.mrf.mxu0  ;;  %v3648_v51 = vpop.f32.mrf.mxu1 }
 0x41b   : > { %v2268_v56 = vpop.f32.mrf.mxu0  ;;  %v2309_v44 = vpop.f32.mrf.mxu1 }
 0x41c   : > { %v2315_v57 = vadd.f32 %v2268_v56, %v2206_v0  ;;  %v2317_v58 = vadd.f32 %v2309_v44, %v2208_v54 }
 0x41d   : > { %v2270_v59 = vpop.f32.mrf.mxu0  ;;  %v3653_v60 = vpop.f32.mrf.mxu1 }
 0x41e   : > { %v2325_v61 = vadd.f32 %v2323_v42, %v2315_v57  ;;  %v2327_v62 = vadd.f32 %v2323_v42, %v2317_v58  ;;  %v2316_v63 = vadd.f32 %v2270_v59, %v2207_v52  ;;  %v3466_v58 = vld [vmem:[%s4396_s3 + $0xc] sm:$0xf] }
 0x41f   : > { %v2272_v1 = vpop.f32.mrf.mxu0  ;;  %v2312_v2 = vpop.f32.mrf.mxu1 }
 0x420   : > { %v2328_v3 = vmax.f32 %v2325_v61, 0.0  ;;  %v2330_v4 = vmax.f32 %v2327_v62, 0.0  ;;  %v2326_v5 = vadd.f32 %v2323_v42, %v2316_v63 }
 0x421   : > { %v2273_v6 = vpop.f32.mrf.mxu0  ;;  %v3654_v7 = vpop.f32.mrf.mxu1 }
 0x422   : > { %2331 = vst [vmem:[%s4019_s25 + $0x18] sm:$0xff] %v2328_v3  ;;  %2333 = vst [vmem:[%s4019_s25 + $0x28] sm:$0xff] %v2330_v4  ;;  %v2329_v8 = vmax.f32 %v2326_v5, 0.0  ;;  %v2336_v9 = vmul.f32 %v2330_v4, %v4026_v27  ;;  %v2334_v10 = vmul.f32 %v2328_v3, %v4021_v21  ;;  %v3469_v3 = vld [vmem:[%s4396_s3 + $0x10] sm:$0xf] }
 0x424   : > { %2332 = vst [vmem:[%s4019_s25 + $0x20] sm:$0xff] %v2329_v8  ;;  %v2335_v11 = vmul.f32 %v2329_v8, %v4023_v22  ;;  %v3492_v12 = vpack.c.bf16 %v2336_v9, %v2336_v9 }
 0x426   : > { %2350 = vrot.lane.b32.xlu0 %v3492_v12, %s3748_s27  ;;  %v3491_v14 = vpack.c.bf16 %v2335_v11, %v2334_v10  ;;  %v3472_v11 = vld [vmem:[%s4396_s3 + $0x14] sm:$0xf] }
 0x428   : > { %2348 = vrot.lane.b32.xlu1 %v3491_v14, %s3748_s27 }
 0x498   : > { %v2351_v15 = vpop.permute.xlu0 %2350 }
 0x499   : > { %v2353_v20 = vrot.slane %v2351_v15, 4 }
 0x49a   : > { %v2349_v16 = vpop.permute.xlu1 %2348 }
 0x49b   : > { %v2352_v23 = vrot.slane %v2349_v16, 4 }
 0x49d   : > { %v2354_v24 = vsel %vm279_vm2, %v2352_v23, %v2349_v16  ;;  %v2355_v25 = vsel %vm281_vm6, %v2352_v23, %v2353_v20  ;;  %vm4408_vm6 = vmmov %vm4405_vm3 }
 0x49e   : > { %v2356_v27 = vsel %vm279_vm2, %v2355_v25, %v2351_v15  ;;  %2359 = vst.msk [vmem:[#allocation2 + $0x10] sm:$0xff] %vm4035_vm5, %v2354_v24  ;;  %vm2398_vm2 = vcmask 130048   ;;  %v3475_v25 = vld [vmem:[%s4396_s3 + $0x18] sm:$0xf] }
 0x49f   : > { %2360 = vst.msk [vmem:[#allocation2 + $0x18] sm:$0xff] %vm4043_vm1, %v2356_v27 }
 0x4a5   : > { %v2363_v21 = vld [vmem:[#allocation2 + $0x10] sm:$0xff] }
 0x4a6   : > { %v3456_v22 = vcombine.high %v4051_v47, %v2363_v21  ;;  %v2364_v26 = vld [vmem:[#allocation2 + $0x18] sm:$0xff]  ;;  %v3455_v32 = vcombine.low %v4051_v47, %v2363_v21 }
 0x4a7   : > { %v3457_v31 = vcombine.low %v4059_v53, %v2364_v26  ;;  %v3458_v33 = vcombine.high %v4059_v53, %v2364_v26 }
 0x4a8   : > { %2386 = vrot.lane.b32.xlu1 %v3456_v22, %s3751_s28 }
 0x4a9   : > { %2388 = vrot.lane.b32.xlu0 %v3457_v31, %s3751_s28 }
 0x4ac   : > { %2384 = vrot.lane.b32.xlu1 %v3455_v32, %s3751_s28 }
 0x4ad   : > { %2390 = vrot.lane.b32.xlu0 %v3458_v33, %s3751_s28 }
 0x4b0   : > { %2574 = vrot.lane.b32.xlu1 %v3456_v22, %s3752_s29 }
 0x4b1   : > { %2576 = vrot.lane.b32.xlu0 %v3457_v31, %s3752_s29 }
 0x4b4   : > { %2572 = vrot.lane.b32.xlu1 %v3455_v32, %s3752_s29 }
 0x4b5   : > { %2578 = vrot.lane.b32.xlu0 %v3458_v33, %s3752_s29 }
 0x4b8   : > { %2677 = vrot.lane.b32.xlu1 %v3456_v22, %s3753_s30 }
 0x4b9   : > { %2679 = vrot.lane.b32.xlu0 %v3457_v31, %s3753_s30 }
 0x4bc   : > { %2675 = vrot.lane.b32.xlu1 %v3455_v32, %s3753_s30 }
 0x4bd   : > { %2681 = vrot.lane.b32.xlu0 %v3458_v33, %s3753_s30 }
 0x4c0   : > { %2780 = vrot.lane.b32.xlu1 %v3456_v22, %s3754_s7 }
 0x4c1   : > { %2782 = vrot.lane.b32.xlu0 %v3457_v31, %s3754_s7 }
 0x4c4   : > { %2778 = vrot.lane.b32.xlu1 %v3455_v32, %s3754_s7 }
 0x4c5   : > { %2784 = vrot.lane.b32.xlu0 %v3458_v33, %s3754_s7 }
 0x4c8   : > { %2883 = vrot.lane.b32.xlu1 %v3456_v22, %s3755_s8 }
 0x4c9   : > { %2885 = vrot.lane.b32.xlu0 %v3457_v31, %s3755_s8 }
 0x4cc   : > { %2881 = vrot.lane.b32.xlu1 %v3455_v32, %s3755_s8 }
 0x4cd   : > { %2887 = vrot.lane.b32.xlu0 %v3458_v33, %s3755_s8 }
 0x4d0   : > { %2986 = vrot.lane.b32.xlu1 %v3456_v22, %s3756_s9 }
 0x4d1   : > { %2988 = vrot.lane.b32.xlu0 %v3457_v31, %s3756_s9 }
 0x4d4   : > { %2984 = vrot.lane.b32.xlu1 %v3455_v32, %s3756_s9 }
 0x4d5   : > { %2990 = vrot.lane.b32.xlu0 %v3458_v33, %s3756_s9 }
 0x4d8   : > { %3089 = vrot.lane.b32.xlu1 %v3456_v22, %s3757_s10 }
 0x4d9   : > { %3091 = vrot.lane.b32.xlu0 %v3457_v31, %s3757_s10 }
 0x4dc   : > { %3087 = vrot.lane.b32.xlu1 %v3455_v32, %s3757_s10 }
 0x4dd   : > { %3093 = vrot.lane.b32.xlu0 %v3458_v33, %s3757_s10 }
 0x4e0   : > { %3192 = vrot.lane.b32.xlu1 %v3456_v22, %s3758_s11 }
 0x4e1   : > { %3194 = vrot.lane.b32.xlu0 %v3457_v31, %s3758_s11 }
 0x4e4   : > { %3190 = vrot.lane.b32.xlu1 %v3455_v32, %s3758_s11 }
 0x4e5   : > { %3196 = vrot.lane.b32.xlu0 %v3458_v33, %s3758_s11  ;;  %v3478_v33 = vld [vmem:[%s4396_s3 + $0x1c] sm:$0xf] }
 0x4e8   : > { %3295 = vperm.xlu1 %3732, %v3484_v36  }
 0x51a   : > { %v2387_v41 = vpop.permute.xlu1 %2386 }
 0x51b   : > { %v2389_v47 = vpop.permute.xlu0 %2388 }
 0x51c   : > { %v2393_v53 = vsel %vm318_vm9, %v2387_v41, %v2389_v47 }
 0x51d   : > { %2416 = vmatprep.subr.bf16.mxu0 %v2393_v53  ;;  %v3481_v53 = vld [vmem:[%s4396_s3 + $0x20] sm:$0xf] }
 0x51e   : > { %v2385_v34 = vpop.permute.xlu1 %2384 }
 0x51f   : > { %v2392_v35 = vsel %vm318_vm9, %v2385_v34, %v2387_v41  ;;  %v2391_v40 = vpop.permute.xlu0 %2390 }
 0x520   : > { %v2394_v45 = vsel %vm318_vm9, %v2389_v47, %v2391_v40  ;;  %2417 = vmatpush1.bf16.msra.mxu0 %v2392_v35  ;;  %vm4409_vm9 = vmmov %vm4405_vm3 }
 0x521   : > { %3656 = vmatpush3.bf16.msra.mxu1 %v2394_v45  ;;  %2503 = vmatprep.subr.bf16.mxu0 %v3456_v22 }
 0x522   : > { %v2575_v48 = vpop.permute.xlu1 %2574  ;;  %3661 = vmatprep.subr.bf16.mxu1 %v3749_v13 }
 0x523   : > { %3459 = vmatmul.mubr.msk.bf16.vlgmr.msra.gmra.mxu0 %vm2398_vm2, %v3454_v46  ;;  %v2577_v50 = vpop.permute.xlu0 %2576 }
 0x524   : > { %3658 = vmatmul.mubr.msk.bf16.vlgmr.msra.gmra.mxu1 %vm2398_vm2, %v3454_v46  ;;  %2504 = vmatpush1.bf16.msra.mxu0 %v3455_v32  ;;  %v2581_v49 = vsel %vm520_vm11, %v2575_v48, %v2577_v50 }
 0x525   : > { %3662 = vmatpush3.bf16.msra.mxu1 %v3457_v31  ;;  %2603 = vmatprep.subr.bf16.mxu0 %v2581_v49 }
 0x526   : > { %v2573_v43 = vpop.permute.xlu1 %2572  ;;  %2521 = vmatprep.mubr.bf16.mxu0 %v4173_v55  ;;  %3663 = vmatprep.mubr.msk.bf16.mxu1 %vm3750_vm8, %v3749_v13 }
 0x527   : > { %v2579_v17 = vpop.permute.xlu0 %2578  ;;  %3667 = vmatprep.subr.bf16.mxu1 %v3749_v13  ;;  %v2580_v29 = vsel %vm520_vm11, %v2573_v43, %v2575_v48 }
 0x528   : > { %v2582_v30 = vsel %vm520_vm11, %v2577_v50, %v2579_v17 }
 0x52a   : > { %v2678_v28 = vpop.permute.xlu1 %2677 }
 0x52b   : > { %3461 = vmatmul.mubr.msk.bf16.vlgmr.msra.gmra.mxu0 %vm2398_vm2, %v2365_v18  ;;  %v2680_v19 = vpop.permute.xlu0 %2679 }
 0x52c   : > { %2604 = vmatpush1.bf16.msra.mxu0 %v2580_v29  ;;  %3664 = vmatmul.mubr.msk.bf16.vlgmr.msra.gmra.mxu1 %vm2398_vm2, %v2365_v18  ;;  %v2684_v37 = vsel %vm630_vm12, %v2678_v28, %v2680_v19 }
 0x52d   : > { %3668 = vmatpush3.bf16.msra.mxu1 %v2582_v30  ;;  %2706 = vmatprep.subr.bf16.mxu0 %v2684_v37 }
 0x52e   : > { %v2676_v38 = vpop.permute.xlu1 %2675  ;;  %2621 = vmatprep.mubr.bf16.mxu0 %v4173_v55  ;;  %3669 = vmatprep.mubr.msk.bf16.mxu1 %vm3750_vm8, %v3749_v13 }
 0x52f   : > { %v2682_v51 = vpop.permute.xlu0 %2681  ;;  %3673 = vmatprep.subr.bf16.mxu1 %v3749_v13  ;;  %v2683_v54 = vsel %vm630_vm12, %v2676_v38, %v2678_v28 }
 0x530   : > { %v2685_v44 = vsel %vm630_vm12, %v2680_v19, %v2682_v51 }
 0x532   : > { %v2781_v0 = vpop.permute.xlu1 %2780 }
 0x533   : > { %3464 = vmatmul.mubr.msk.bf16.vlgmr.msra.gmra.mxu0 %vm2398_vm2, %v3463_v39  ;;  %v2783_v56 = vpop.permute.xlu0 %2782 }
 0x534   : > { %2707 = vmatpush1.bf16.msra.mxu0 %v2683_v54  ;;  %3670 = vmatmul.mubr.msk.bf16.vlgmr.msra.gmra.mxu1 %vm2398_vm2, %v3463_v39  ;;  %v2787_v42 = vsel %vm740_vm13, %v2781_v0, %v2783_v56 }
 0x535   : > { %3674 = vmatpush3.bf16.msra.mxu1 %v2685_v44  ;;  %2809 = vmatprep.subr.bf16.mxu0 %v2787_v42 }
 0x536   : > { %v2779_v52 = vpop.permute.xlu1 %2778  ;;  %2724 = vmatprep.mubr.bf16.mxu0 %v4173_v55  ;;  %3675 = vmatprep.mubr.msk.bf16.mxu1 %vm3750_vm8, %v3749_v13 }
 0x537   : > { %v2785_v57 = vpop.permute.xlu0 %2784  ;;  %3679 = vmatprep.subr.bf16.mxu1 %v3749_v13  ;;  %v2786_v60 = vsel %vm740_vm13, %v2779_v52, %v2781_v0 }
 0x538   : > { %v2788_v62 = vsel %vm740_vm13, %v2783_v56, %v2785_v57 }
 0x53a   : > { %v2884_v59 = vpop.permute.xlu1 %2883 }
 0x53b   : > { %3467 = vmatmul.mubr.msk.bf16.vlgmr.msra.gmra.mxu0 %vm2398_vm2, %v3466_v58  ;;  %v2886_v61 = vpop.permute.xlu0 %2885 }
 0x53c   : > { %2810 = vmatpush1.bf16.msra.mxu0 %v2786_v60  ;;  %3676 = vmatmul.mubr.msk.bf16.vlgmr.msra.gmra.mxu1 %vm2398_vm2, %v3466_v58  ;;  %v2890_v63 = vsel %vm850_vm14, %v2884_v59, %v2886_v61 }
 0x53d   : > { %3680 = vmatpush3.bf16.msra.mxu1 %v2788_v62  ;;  %2912 = vmatprep.subr.bf16.mxu0 %v2890_v63 }
 0x53e   : > { %v2882_v1 = vpop.permute.xlu1 %2881  ;;  %2827 = vmatprep.mubr.bf16.mxu0 %v4173_v55  ;;  %3681 = vmatprep.mubr.msk.bf16.mxu1 %vm3750_vm8, %v3749_v13 }
 0x53f   : > { %v2888_v2 = vpop.permute.xlu0 %2887  ;;  %3685 = vmatprep.subr.bf16.mxu1 %v3749_v13  ;;  %v2889_v5 = vsel %vm850_vm14, %v2882_v1, %v2884_v59 }
 0x540   : > { %v2891_v7 = vsel %vm850_vm14, %v2886_v61, %v2888_v2 }
 0x542   : > { %v2987_v4 = vpop.permute.xlu1 %2986 }
 0x543   : > { %3470 = vmatmul.mubr.msk.bf16.vlgmr.msra.gmra.mxu0 %vm2398_vm2, %v3469_v3  ;;  %v2989_v6 = vpop.permute.xlu0 %2988 }
 0x544   : > { %2913 = vmatpush1.bf16.msra.mxu0 %v2889_v5  ;;  %3682 = vmatmul.mubr.msk.bf16.vlgmr.msra.gmra.mxu1 %vm2398_vm2, %v3469_v3  ;;  %v2993_v8 = vsel %vm960_vm15, %v2987_v4, %v2989_v6 }
 0x545   : > { %3686 = vmatpush3.bf16.msra.mxu1 %v2891_v7  ;;  %3015 = vmatprep.subr.bf16.mxu0 %v2993_v8 }
 0x546   : > { %v2985_v9 = vpop.permute.xlu1 %2984  ;;  %2930 = vmatprep.mubr.bf16.mxu0 %v4173_v55  ;;  %3687 = vmatprep.mubr.msk.bf16.mxu1 %vm3750_vm8, %v3749_v13 }
 0x547   : > { %v2991_v10 = vpop.permute.xlu0 %2990  ;;  %3691 = vmatprep.subr.bf16.mxu1 %v3749_v13  ;;  %v2992_v14 = vsel %vm960_vm15, %v2985_v9, %v2987_v4 }
 0x548   : > { %v2994_v16 = vsel %vm960_vm15, %v2989_v6, %v2991_v10 }
 0x54a   : > { %v3090_v12 = vpop.permute.xlu1 %3089 }
 0x54b   : > { %3473 = vmatmul.mubr.msk.bf16.vlgmr.msra.gmra.mxu0 %vm2398_vm2, %v3472_v11  ;;  %v3092_v15 = vpop.permute.xlu0 %3091 }
 0x54c   : > { %3016 = vmatpush1.bf16.msra.mxu0 %v2992_v14  ;;  %3688 = vmatmul.mubr.msk.bf16.vlgmr.msra.gmra.mxu1 %vm2398_vm2, %v3472_v11  ;;  %v3096_v20 = vsel %vm1070_vm0, %v3090_v12, %v3092_v15 }
 0x54d   : > { %3692 = vmatpush3.bf16.msra.mxu1 %v2994_v16  ;;  %3118 = vmatprep.subr.bf16.mxu0 %v3096_v20 }
 0x54e   : > { %v3088_v23 = vpop.permute.xlu1 %3087  ;;  %3033 = vmatprep.mubr.bf16.mxu0 %v4173_v55  ;;  %3693 = vmatprep.mubr.msk.bf16.mxu1 %vm3750_vm8, %v3749_v13 }
 0x54f   : > { %v3094_v24 = vpop.permute.xlu0 %3093  ;;  %3697 = vmatprep.subr.bf16.mxu1 %v3749_v13  ;;  %v3095_v21 = vsel %vm1070_vm0, %v3088_v23, %v3090_v12 }
 0x550   : > { %v3097_v26 = vsel %vm1070_vm0, %v3092_v15, %v3094_v24 }
 0x552   : > { %v3193_v27 = vpop.permute.xlu1 %3192 }
 0x553   : > { %3476 = vmatmul.mubr.msk.bf16.vlgmr.msra.gmra.mxu0 %vm2398_vm2, %v3475_v25  ;;  %v3195_v22 = vpop.permute.xlu0 %3194 }
 0x554   : > { %3119 = vmatpush1.bf16.msra.mxu0 %v3095_v21  ;;  %3694 = vmatmul.mubr.msk.bf16.vlgmr.msra.gmra.mxu1 %vm2398_vm2, %v3475_v25  ;;  %v3199_v31 = vsel %vm4408_vm6, %v3193_v27, %v3195_v22 }
 0x555   : > { %3698 = vmatpush3.bf16.msra.mxu1 %v3097_v26  ;;  %3221 = vmatprep.subr.bf16.mxu0 %v3199_v31 }
 0x556   : > { %3136 = vmatprep.mubr.bf16.mxu0 %v4173_v55  ;;  %3699 = vmatprep.mubr.msk.bf16.mxu1 %vm3750_vm8, %v3749_v13  ;;  %v3191_v32 = vpop.permute.xlu1 %3190 }
 0x557   : > { %3703 = vmatprep.subr.bf16.mxu1 %v3749_v13  ;;  %v3197_v36 = vpop.permute.xlu0 %3196  ;;  %v3198_v41 = vsel %vm4409_vm9, %v3191_v32, %v3193_v27 }
 0x558   : > { %v3200_v47 = vsel %vm4410_vm10, %v3195_v22, %v3197_v36 }
 0x55b   : > { %3479 = vmatmul.mubr.msk.bf16.vlgmr.msra.gmra.mxu0 %vm2398_vm2, %v3478_v33 }
 0x55c   : > { %3222 = vmatpush1.bf16.msra.mxu0 %v3198_v41  ;;  %3700 = vmatmul.mubr.msk.bf16.vlgmr.msra.gmra.mxu1 %vm2398_vm2, %v3478_v33 }
 0x55d   : > { %3704 = vmatpush3.bf16.msra.mxu1 %v3200_v47  ;;  %3239 = vmatprep.mubr.bf16.mxu0 %v4173_v55 }
 0x55e   : > { %3705 = vmatprep.mubr.msk.bf16.mxu1 %vm3750_vm8, %v3749_v13 }
 0x563   : > { %3482 = vmatmul.mubr.msk.bf16.vlgmr.msra.gmra.mxu0 %vm2398_vm2, %v3481_v53 }
 0x564   : > { %3706 = vmatmul.mubr.msk.bf16.vlgmr.msra.gmra.mxu1 %vm2398_vm2, %v3481_v53 }
 0x5e3   : > { %v2436_v34 = vpop.f32.mrf.mxu0 }
 0x5e4   : > { %v2477_v35 = vpop.f32.mrf.mxu1 }
 0x5e5   : > { %v2438_v40 = vpop.f32.mrf.mxu0 }
 0x5e6   : > { %v3659_v45 = vpop.f32.mrf.mxu1 }
 0x5e7   : > { %v2440_v46 = vpop.f32.mrf.mxu0 }
 0x5e8   : > { %v2480_v48 = vpop.f32.mrf.mxu1 }
 0x5e9   : > { %v2441_v50 = vpop.f32.mrf.mxu0 }
 0x5ea   : > { %v3660_v49 = vpop.f32.mrf.mxu1 }
 0x5eb   : > { %v2523_v55 = vpop.f32.mrf.mxu0 }
 0x5ec   : > { %v2564_v43 = vpop.f32.mrf.mxu1  ;;  %v2524_v24 = vadd.f32 %v2523_v55, %v2436_v34 }
 0x5ed   : > { %v2525_v17 = vpop.f32.mrf.mxu0  ;;  %v2565_v27 = vadd.f32 %v2564_v43, %v2477_v35 }
 0x5ee   : > { %v3665_v13 = vpop.f32.mrf.mxu1  ;;  %v2526_v22 = vadd.f32 %v2525_v17, %v2438_v40 }
 0x5ef   : > { %v2527_v18 = vpop.f32.mrf.mxu0 }
 0x5f0   : > { %v2567_v28 = vpop.f32.mrf.mxu1 }
 0x5f1   : > { %v2528_v29 = vpop.f32.mrf.mxu0 }
 0x5f2   : > { %v3666_v19 = vpop.f32.mrf.mxu1 }
 0x5f3   : > { %v2623_v30 = vpop.f32.mrf.mxu0 }
 0x5f4   : > { %v2664_v37 = vpop.f32.mrf.mxu1  ;;  %v2670_v26 = vadd.f32 %v2623_v30, %v2524_v24 }
 0x5f5   : > { %v2625_v38 = vpop.f32.mrf.mxu0  ;;  %v2672_v32 = vadd.f32 %v2664_v37, %v2565_v27 }
 0x5f6   : > { %v3671_v51 = vpop.f32.mrf.mxu1  ;;  %v2671_v36 = vadd.f32 %v2625_v38, %v2526_v22 }
 0x5f7   : > { %v2627_v39 = vpop.f32.mrf.mxu0 }
 0x5f8   : > { %v2667_v0 = vpop.f32.mrf.mxu1 }
 0x5f9   : > { %v2628_v54 = vpop.f32.mrf.mxu0  ;;  %v3296_v0 = vpop.permute.xlu1 %3295 }
 0x5fa   : > { %v3672_v56 = vpop.f32.mrf.mxu1 }
 0x5fb   : > { %v2726_v44 = vpop.f32.mrf.mxu0 }
 0x5fc   : > { %v2767_v42 = vpop.f32.mrf.mxu1  ;;  %v2773_v41 = vadd.f32 %v2726_v44, %v2670_v26 }
 0x5fd   : > { %v2728_v52 = vpop.f32.mrf.mxu0  ;;  %v2775_v53 = vadd.f32 %v2767_v42, %v2672_v32 }
 0x5fe   : > { %v3677_v57 = vpop.f32.mrf.mxu1  ;;  %v2774_v46 = vadd.f32 %v2728_v52, %v2671_v36 }
 0x5ff   : > { %v2730_v58 = vpop.f32.mrf.mxu0 }
 0x600   : > { %v2770_v59 = vpop.f32.mrf.mxu1 }
 0x601   : > { %v2731_v60 = vpop.f32.mrf.mxu0 }
 0x602   : > { %v3678_v61 = vpop.f32.mrf.mxu1 }
 0x603   : > { %v2829_v62 = vpop.f32.mrf.mxu0 }
 0x604   : > { %v2870_v63 = vpop.f32.mrf.mxu1  ;;  %v2876_v48 = vadd.f32 %v2829_v62, %v2773_v41 }
 0x605   : > { %v2831_v1 = vpop.f32.mrf.mxu0  ;;  %v2878_v49 = vadd.f32 %v2870_v63, %v2775_v53 }
 0x606   : > { %v3683_v2 = vpop.f32.mrf.mxu1  ;;  %v2877_v18 = vadd.f32 %v2831_v1, %v2774_v46 }
 0x607   : > { %v2833_v3 = vpop.f32.mrf.mxu0 }
 0x608   : > { %v2873_v4 = vpop.f32.mrf.mxu1 }
 0x609   : > { %v2834_v5 = vpop.f32.mrf.mxu0 }
 0x60a   : > { %v3684_v6 = vpop.f32.mrf.mxu1 }
 0x60b   : > { %v2932_v7 = vpop.f32.mrf.mxu0 }
 0x60c   : > { %v2973_v8 = vpop.f32.mrf.mxu1  ;;  %v2979_v34 = vadd.f32 %v2932_v7, %v2876_v48 }
 0x60d   : > { %v2934_v9 = vpop.f32.mrf.mxu0  ;;  %v2981_v35 = vadd.f32 %v2973_v8, %v2878_v49 }
 0x60e   : > { %v3689_v10 = vpop.f32.mrf.mxu1  ;;  %v2980_v40 = vadd.f32 %v2934_v9, %v2877_v18 }
 0x60f   : > { %v2936_v11 = vpop.f32.mrf.mxu0 }
 0x610   : > { %v2976_v12 = vpop.f32.mrf.mxu1 }
 0x611   : > { %v2937_v14 = vpop.f32.mrf.mxu0 }
 0x612   : > { %v3690_v15 = vpop.f32.mrf.mxu1 }
 0x613   : > { %v3035_v16 = vpop.f32.mrf.mxu0 }
 0x614   : > { %v3076_v20 = vpop.f32.mrf.mxu1  ;;  %v3082_v17 = vadd.f32 %v3035_v16, %v2979_v34 }
 0x615   : > { %v3037_v23 = vpop.f32.mrf.mxu0  ;;  %v3084_v29 = vadd.f32 %v3076_v20, %v2981_v35 }
 0x616   : > { %v3695_v25 = vpop.f32.mrf.mxu1  ;;  %v3083_v30 = vadd.f32 %v3037_v23, %v2980_v40 }
 0x617   : > { %v3039_v21 = vpop.f32.mrf.mxu0 }
 0x618   : > { %v3079_v31 = vpop.f32.mrf.mxu1 }
 0x619   : > { %v3040_v33 = vpop.f32.mrf.mxu0 }
 0x61a   : > { %v3696_v47 = vpop.f32.mrf.mxu1 }
 0x61b   : > { %v3138_v45 = vpop.f32.mrf.mxu0 }
 0x61c   : > { %v3179_v50 = vpop.f32.mrf.mxu1  ;;  %v3185_v37 = vadd.f32 %v3138_v45, %v3082_v17 }
 0x61d   : > { %v3140_v13 = vpop.f32.mrf.mxu0  ;;  %v3187_v51 = vadd.f32 %v3179_v50, %v3084_v29 }
 0x61e   : > { %v3701_v55 = vpop.f32.mrf.mxu1  ;;  %v3186_v54 = vadd.f32 %v3140_v13, %v3083_v30 }
 0x61f   : > { %v3142_v43 = vpop.f32.mrf.mxu0 }
 0x620   : > { %v3182_v28 = vpop.f32.mrf.mxu1 }
 0x621   : > { %v3143_v19 = vpop.f32.mrf.mxu0 }
 0x622   : > { %v3702_v38 = vpop.f32.mrf.mxu1 }
 0x623   : > { %v3241_v39 = vpop.f32.mrf.mxu0 }
 0x624   : > { %v3288_v56 = vadd.f32 %v3241_v39, %v3185_v37  ;;  %v3282_v44 = vpop.f32.mrf.mxu1 }
 0x625   : > { %v3290_v42 = vadd.f32 %v3282_v44, %v3187_v51  ;;  %v3243_v52 = vpop.f32.mrf.mxu0 }
 0x626   : > { %v3298_v57 = vadd.f32 %v3296_v0, %v3288_v56  ;;  %v3289_v58 = vadd.f32 %v3243_v52, %v3186_v54  ;;  %v3707_v59 = vpop.f32.mrf.mxu1 }
 0x627   : > { %v3300_v60 = vadd.f32 %v3296_v0, %v3290_v42  ;;  %v3245_v61 = vpop.f32.mrf.mxu0 }
 0x628   : > { %v3301_v62 = vmax.f32 %v3298_v57, 0.0  ;;  %v3299_v63 = vadd.f32 %v3296_v0, %v3289_v58  ;;  %v3285_v1 = vpop.f32.mrf.mxu1 }
 0x629   : > { %v3303_v2 = vmax.f32 %v3300_v60, 0.0  ;;  %v3246_v3 = vpop.f32.mrf.mxu0 }
 0x62a   : > { %3304 = vst [vmem:[%s4019_s25 + $0x30] sm:$0xff] %v3301_v62  ;;  %v3302_v4 = vmax.f32 %v3299_v63, 0.0  ;;  %v3708_v5 = vpop.f32.mrf.mxu1 }
 0x62b   : > { %3306 = vst [vmem:[%s4019_s25 + $0x40] sm:$0xff] %v3303_v2 }
 0x62c   : > { %3305 = vst [vmem:[%s4019_s25 + $0x38] sm:$0xff] %v3302_v4 }
 0x62d PF: > { %s16_s21 = sadd.s32 1, %s3745_s21  }
 0x62e   : > { %p13_p4 = scmp.ge.s32.totalorder %s16_s21, 4  }
 0x630   :  { %15 = sbr.rel (!%p13_p4) target bundleno = 1 (0x1), region = 100 }

</bundles_post_ra>
